<compile_context>
chip_gen: v7x
topology: tpu7x:2x2x1
jax: 0.10.0
libtpu: 0.0.40
codegen_flags: <defaults>
</compile_context>

<pallas_src>
import functools
import math

import jax
import jax.numpy as jnp
from jax import lax
from jax.experimental import pallas as pl
from jax.experimental.pallas import tpu as pltpu

EPS = 1e-5      # nn.LayerNorm default eps
LANE = 128
SUBLANE = 8
# PyTorch LSTM gate order is (i, f, g, o); repack to (i, f, o, g) so the kernel
# does one sigmoid over 3 contiguous gate blocks and one tanh over the last.
GATE_ORDER = (0, 1, 3, 2)


def _round_up(n, m):
    return ((n + m - 1) // m) * m


def golfer_kernel(
    state_ref, side_ref,
    w1_ref, b1_ref, g1_ref, be1_ref,
    w2x_ref, w2s_ref, b2_ref, g2_ref, be2_ref,
    wih_ref, whh_ref, blstm_ref,
    w3_ref, b3_ref, g3_ref, be3_ref,
    wmu_ref, bmu_ref,
    out_ref,
    *, B, Bp, H0, H1, H3, Hg,
):
    f32 = jnp.float32

    def ln_masked(x, gamma, beta, n):
        # LayerNorm over the first `n` lanes of a zero-padded (rows, P) block.
        lane = lax.broadcasted_iota(jnp.int32, x.shape, x.ndim - 1)
        mean = jnp.sum(x, axis=-1, keepdims=True) * (1.0 / n)
        xc = x - mean
        xc_m = jnp.where(lane < n, xc, 0.0)
        var = jnp.sum(xc_m * xc_m, axis=-1, keepdims=True) * (1.0 / n)
        # gamma/beta are zero in padded lanes -> padded lanes stay exactly 0.
        return xc * lax.rsqrt(var + EPS) * gamma + beta

    # ---- linear1 -> LayerNorm -> ReLU ----
    x1 = jnp.dot(state_ref[...], w1_ref[...], preferred_element_type=f32) + b1_ref[...]
    x1 = jnp.maximum(ln_masked(x1, g1_ref[...], be1_ref[...], H0), 0.0)

    # ---- linear2 over cat(x, actionA, qA, actionB, qB): the side block was
    #      concatenated in the wrapper, so this is just two matmuls. ----
    x2 = (jnp.dot(x1, w2x_ref[...], preferred_element_type=f32)
          + jnp.dot(side_ref[...], w2s_ref[...], preferred_element_type=f32)
          + b2_ref[...])
    x2 = ln_masked(x2, g2_ref[...], be2_ref[...], H1)

    # ---- LSTM: x.view(len(x), 1, -1) => seq_len = batch rows, batch = 1,
    #      zero initial (h, c). Hoisted input-to-hidden projection with both
    #      biases folded in: one batched (Bp, 4*Hg) matmul, kept as a value
    #      (no VMEM scratch round-trip). ----
    xg = jnp.dot(x2, wih_ref[...], preferred_element_type=f32) + blstm_ref[...]
    whh = whh_ref[...]

    h = jnp.zeros((1, Hg), f32)
    c = jnp.zeros((1, Hg), f32)
    rows = []
    # Fully unrolled serial recurrence (B is small and static).  Gates packed
    # as (i, f, o, g): padded gate lanes stay inert (sigmoid(0)*tanh(0) == 0).
    # TODO(synk): for much larger B, switch to a bounded-unroll fori_loop with
    #             a small VMEM scratch to limit code size / live ranges.
    for t in range(B):
        gates = xg[t:t + 1, :] + jnp.dot(h, whh, preferred_element_type=f32)
        sig = jax.nn.sigmoid(gates[:, :3 * Hg])
        i = sig[:, :Hg]
        f = sig[:, Hg:2 * Hg]
        o = sig[:, 2 * Hg:3 * Hg]
        g = jnp.tanh(gates[:, 3 * Hg:])
        c = f * c + i * g
        h = o * jnp.tanh(c)
        rows.append(h)
    if Bp > B:
        rows.append(jnp.zeros((Bp - B, Hg), f32))
    hs = jnp.concatenate(rows, axis=0)
    # TODO(synk): persistent self.hidden_params across calls (stateful
    #             nn.Module attr) is not carried across kernel invocations.

    # ---- linear3 -> LayerNorm -> ReLU -> mu -> tanh ----
    x3 = jnp.dot(hs, w3_ref[...], preferred_element_type=f32) + b3_ref[...]
    x3 = jnp.maximum(ln_masked(x3, g3_ref[...], be3_ref[...], H3), 0.0)
    out_ref[...] = jnp.tanh(
        jnp.dot(x3, wmu_ref[...], preferred_element_type=f32) + bmu_ref[...])


def init_params(key, state_size, hidden_size, num_outputs):
    """Deterministic re-implementation of the module's init (fan_in uniform etc.)."""
    H0, H1, H2, H3 = hidden_size
    A = num_outputs
    D2 = H0 + 2 * (A + 1)
    ks = jax.random.split(key, 12)

    def u(k, shape, bound):
        return jax.random.uniform(k, shape, jnp.float32, -bound, bound)

    p = {}
    # linear1 / linear2 / linear3: fan_in_uniform_init on weight and bias
    p["w1"] = u(ks[0], (state_size, H0), 1.0 / math.sqrt(state_size))
    p["b1"] = u(ks[1], (1, H0), 1.0 / math.sqrt(H0))
    p["w2"] = u(ks[2], (D2, H1), 1.0 / math.sqrt(D2))
    p["b2"] = u(ks[3], (1, H1), 1.0 / math.sqrt(H1))
    p["w3"] = u(ks[4], (H2, H3), 1.0 / math.sqrt(H2))
    p["b3"] = u(ks[5], (1, H3), 1.0 / math.sqrt(H3))
    # mu head: uniform(-0.003, 0.003) weights, uniform(-3e-4, 3e-4) bias
    p["wmu"] = u(ks[6], (H3, A), 0.003)
    p["bmu"] = u(ks[7], (1, A), 0.0003)
    # LayerNorms: default affine init
    p["g1"], p["be1"] = jnp.ones((1, H0), jnp.float32), jnp.zeros((1, H0), jnp.float32)
    p["g2"], p["be2"] = jnp.ones((1, H1), jnp.float32), jnp.zeros((1, H1), jnp.float32)
    p["g3"], p["be3"] = jnp.ones((1, H3), jnp.float32), jnp.zeros((1, H3), jnp.float32)
    # LSTM: PyTorch default uniform(-1/sqrt(H2), 1/sqrt(H2)); gates i,f,g,o order
    b = 1.0 / math.sqrt(H2)
    p["wih"] = u(ks[8], (H1, 4 * H2), b)
    p["whh"] = u(ks[9], (H2, 4 * H2), b)
    p["bih"] = u(ks[10], (1, 4 * H2), b)
    p["bhh"] = u(ks[11], (1, 4 * H2), b)
    return p


def _pad2(x, r, c):
    x = jnp.asarray(x, jnp.float32)
    return jnp.pad(x, ((0, r - x.shape[0]), (0, c - x.shape[1])))


def prepare_padded_params(params, state_size, hidden_size, num_outputs):
    """One-time weight padding / gate repack — hoisted out of the per-call path."""
    H0, H1, H2, H3 = hidden_size
    A = num_outputs
    Dside = 2 * (A + 1)

    Sp, H0p, H1p = _round_up(state_size, LANE), _round_up(H0, LANE), _round_up(H1, LANE)
    Hg, H3p, Ap = _round_up(H2, LANE), _round_up(H3, LANE), _round_up(A, LANE)
    Dsp = _round_up(Dside, LANE)

    def pad_gates(w, rows_p):
        # Pad each gate block to 128 lanes and repack to (i, f, o, g).
        return jnp.concatenate(
            [_pad2(w[:, k * H2:(k + 1) * H2], rows_p, Hg) for k in GATE_ORDER], axis=1)

    w2 = params["w2"]
    bsum = params["bih"] + params["bhh"]   # fold both LSTM biases once
    p = dict(
        w1=_pad2(params["w1"], Sp, H0p), b1=_pad2(params["b1"], 1, H0p),
        g1=_pad2(params["g1"], 1, H0p), be1=_pad2(params["be1"], 1, H0p),
        # linear2 rows split to match torch.cat((x, actionA, qA, actionB, qB), 1)
        w2x=_pad2(w2[:H0], H0p, H1p), w2s=_pad2(w2[H0:], Dsp, H1p),
        b2=_pad2(params["b2"], 1, H1p),
        g2=_pad2(params["g2"], 1, H1p), be2=_pad2(params["be2"], 1, H1p),
        wih=pad_gates(params["wih"], H1p), whh=pad_gates(params["whh"], Hg),
        blstm=jnp.concatenate(
            [_pad2(bsum[:, k * H2:(k + 1) * H2], 1, Hg) for k in GATE_ORDER], axis=1),
        w3=_pad2(params["w3"], Hg, H3p), b3=_pad2(params["b3"], 1, H3p),
        g3=_pad2(params["g3"], 1, H3p), be3=_pad2(params["be3"], 1, H3p),
        wmu=_pad2(params["wmu"], H3p, Ap), bmu=_pad2(params["bmu"], 1, Ap),
    )
    return jax.device_put(p)


def make_golfer_forward(padded, hidden_size):
    """Returns a jitted forward over N independent Golfer instances.

    Returned fn args: states (N,B,S), actionsA/actionsB (N,B,A),
    q_valuesA/q_valuesB (N,B,1).  Output: (N, B, 1, A), matching the PyTorch
    module's (len(state), 1, num_outputs) per instance.
    """
    H0, H1, H2, H3 = hidden_size
    Hg = _round_up(H2, LANE)

    weight_names = ("w1", "b1", "g1", "be1", "w2x", "w2s", "b2", "g2", "be2",
                    "wih", "whh", "blstm", "w3", "b3", "g3", "be3", "wmu", "bmu")
    weights = tuple(padded[name] for name in weight_names)

    Sp, H0p = padded["w1"].shape
    Dsp = padded["w2s"].shape[0]
    Ap = padded["wmu"].shape[1]

    @jax.jit
    def forward(states, actionsA, q_valuesA, actionsB, q_valuesB):
        N, B, _ = states.shape
        A = actionsA.shape[-1]
        Bp = _round_up(max(B, SUBLANE), SUBLANE)

        def pad3(x, r, c):
            x = x.astype(jnp.float32)
            return jnp.pad(x, ((0, 0), (0, r - x.shape[1]), (0, c - x.shape[2])))

        # Only the small activation inputs are padded per call.
        states_p = pad3(states, Bp, Sp)
        side = jnp.concatenate([actionsA, q_valuesA, actionsB, q_valuesB], axis=-1)
        side_p = pad3(side, Bp, Dsp)

        def inst_spec(rows, cols):
            # Per-instance block; leading (instance) dim squeezed away.
            return pl.BlockSpec((None, rows, cols), lambda n: (n, 0, 0))

        def const_spec(arr):
            # Constant index_map -> weights stay VMEM-resident across the grid.
            return pl.BlockSpec(arr.shape, lambda n: (0, 0))

        kern = functools.partial(golfer_kernel, B=B, Bp=Bp,
                                 H0=H0, H1=H1, H3=H3, Hg=Hg)
        out = pl.pallas_call(
            kern,
            grid=(N,),
            out_shape=jax.ShapeDtypeStruct((N, Bp, Ap), jnp.float32),
            in_specs=[inst_spec(Bp, Sp), inst_spec(Bp, Dsp)]
                     + [const_spec(w) for w in weights],
            out_specs=inst_spec(Bp, Ap),
            compiler_params=pltpu.CompilerParams(
                dimension_semantics=("parallel",)),
        )(states_p, side_p, *weights)
        return out[:, :B, :A].reshape(N, B, 1, A)

    return forward


def golfer_reference(params, state, actionA, q_valueA, actionB, q_valueB, hidden_size):
    """Pure-JAX reference mirroring the PyTorch forward exactly (unpadded)."""
    H0, H1, H2, H3 = hidden_size
    B = state.shape[0]
    A = actionA.shape[1]

    def layernorm(x, gamma, beta):
        mean = jnp.mean(x, axis=-1, keepdims=True)
        xc = x - mean
        var = jnp.mean(xc * xc, axis=-1, keepdims=True)
        return xc * lax.rsqrt(var + EPS) * gamma + beta

    x = state @ params["w1"] + params["b1"]
    x = jnp.maximum(layernorm(x, params["g1"], params["be1"]), 0.0)
    cat = jnp.concatenate([x, actionA, q_valueA, actionB, q_valueB], axis=1)
    x = cat @ params["w2"] + params["b2"]
    x = layernorm(x, params["g2"], params["be2"])

    def step(carry, xt):
        h, c = carry
        gates = xt @ params["wih"] + h @ params["whh"] \
            + params["bih"][0] + params["bhh"][0]
        i, f, g, o = jnp.split(gates, 4, axis=-1)
        c = jax.nn.sigmoid(f) * c + jax.nn.sigmoid(i) * jnp.tanh(g)
        h = jax.nn.sigmoid(o) * jnp.tanh(c)
        return (h, c), h

    (_, _), hs = lax.scan(step, (jnp.zeros((H2,)), jnp.zeros((H2,))), x)
    x = hs @ params["w3"] + params["b3"]
    x = jnp.maximum(layernorm(x, params["g3"], params["be3"]), 0.0)
    mu = jnp.tanh(x @ params["wmu"] + params["bmu"])
    return mu.reshape(B, 1, A)


if __name__ == "__main__":
    # Small, forward-consistent shapes.
    N_INST = 2            # independent Golfer forward passes (parallel grid axis)
    B = 8                 # batch (== LSTM sequence length after .view(len(x), 1, -1))
    STATE_SIZE = 8
    NUM_OUTPUTS = 2       # action_space.shape[0]
    HIDDEN = (32, 64, 48, 32)

    root = jax.random.PRNGKey(0)
    k_par, k_s, k_aA, k_qA, k_aB, k_qB = jax.random.split(root, 6)

    params = init_params(k_par, STATE_SIZE, HIDDEN, NUM_OUTPUTS)
    padded = prepare_padded_params(params, STATE_SIZE, HIDDEN, NUM_OUTPUTS)
    fwd = make_golfer_forward(padded, HIDDEN)

    states = jax.random.normal(k_s, (N_INST, B, STATE_SIZE), jnp.float32)
    # Stand-ins for agentA/agentB actor actions (tanh-bounded) and critic Q-values.
    actionsA = jnp.tanh(jax.random.normal(k_aA, (N_INST, B, NUM_OUTPUTS), jnp.float32))
    actionsB = jnp.tanh(jax.random.normal(k_aB, (N_INST, B, NUM_OUTPUTS), jnp.float32))
    q_valuesA = jax.random.normal(k_qA, (N_INST, B, 1), jnp.float32)
    q_valuesB = jax.random.normal(k_qB, (N_INST, B, 1), jnp.float32)

    mu = fwd(states, actionsA, q_valuesA, actionsB, q_valuesB)
    mu = jax.block_until_ready(mu)
    assert mu.shape == (N_INST, B, 1, NUM_OUTPUTS)

    for n in range(N_INST):
        ref = golfer_reference(params, states[n], actionsA[n], q_valuesA[n],
                               actionsB[n], q_valuesB[n], HIDDEN)
        assert jnp.allclose(mu[n], ref, atol=1e-4, rtol=1e-4), \
            f"mismatch vs JAX reference for instance {n}"

    print("KERNEL_OK")
</pallas_src>

<mosaic_0001>
module attributes {stable_mosaic.version = 11 : i64} {
  func.func @golfer_kernel(%arg0: i32, %arg1: memref<1x8x128xf32, #tpu.memory_space<vmem>>, %arg2: memref<1x8x128xf32, #tpu.memory_space<vmem>>, %arg3: memref<128x128xf32, #tpu.memory_space<vmem>>, %arg4: memref<1x128xf32, #tpu.memory_space<vmem>>, %arg5: memref<1x128xf32, #tpu.memory_space<vmem>>, %arg6: memref<1x128xf32, #tpu.memory_space<vmem>>, %arg7: memref<128x128xf32, #tpu.memory_space<vmem>>, %arg8: memref<128x128xf32, #tpu.memory_space<vmem>>, %arg9: memref<1x128xf32, #tpu.memory_space<vmem>>, %arg10: memref<1x128xf32, #tpu.memory_space<vmem>>, %arg11: memref<1x128xf32, #tpu.memory_space<vmem>>, %arg12: memref<128x512xf32, #tpu.memory_space<vmem>>, %arg13: memref<128x512xf32, #tpu.memory_space<vmem>>, %arg14: memref<1x512xf32, #tpu.memory_space<vmem>>, %arg15: memref<128x128xf32, #tpu.memory_space<vmem>>, %arg16: memref<1x128xf32, #tpu.memory_space<vmem>>, %arg17: memref<1x128xf32, #tpu.memory_space<vmem>>, %arg18: memref<1x128xf32, #tpu.memory_space<vmem>>, %arg19: memref<128x128xf32, #tpu.memory_space<vmem>>, %arg20: memref<1x128xf32, #tpu.memory_space<vmem>>, %arg21: memref<1x8x128xf32, #tpu.memory_space<vmem>>) attributes {dimension_semantics = [#tpu.dimension_semantics<parallel>], iteration_bounds = array<i64: 2>, scalar_prefetch = 0 : i64, scratch_operands = 0 : i64, tpu.core_type = #tpu.core_type<tc>, window_params = [{transform_indices = @transform_0, window_bounds = array<i64: 1, 8, 128>}, {transform_indices = @transform_1, window_bounds = array<i64: 1, 8, 128>}, {pipeline_mode = #tpu.pipeline_mode<synchronous>, transform_indices = @transform_2, window_bounds = array<i64: 128, 128>}, {pipeline_mode = #tpu.pipeline_mode<synchronous>, transform_indices = @transform_3, window_bounds = array<i64: 1, 128>}, {pipeline_mode = #tpu.pipeline_mode<synchronous>, transform_indices = @transform_4, window_bounds = array<i64: 1, 128>}, {pipeline_mode = #tpu.pipeline_mode<synchronous>, transform_indices = @transform_5, window_bounds = array<i64: 1, 128>}, {pipeline_mode = #tpu.pipeline_mode<synchronous>, transform_indices = @transform_6, window_bounds = array<i64: 128, 128>}, {pipeline_mode = #tpu.pipeline_mode<synchronous>, transform_indices = @transform_7, window_bounds = array<i64: 128, 128>}, {pipeline_mode = #tpu.pipeline_mode<synchronous>, transform_indices = @transform_8, window_bounds = array<i64: 1, 128>}, {pipeline_mode = #tpu.pipeline_mode<synchronous>, transform_indices = @transform_9, window_bounds = array<i64: 1, 128>}, {pipeline_mode = #tpu.pipeline_mode<synchronous>, transform_indices = @transform_10, window_bounds = array<i64: 1, 128>}, {pipeline_mode = #tpu.pipeline_mode<synchronous>, transform_indices = @transform_11, window_bounds = array<i64: 128, 512>}, {pipeline_mode = #tpu.pipeline_mode<synchronous>, transform_indices = @transform_12, window_bounds = array<i64: 128, 512>}, {pipeline_mode = #tpu.pipeline_mode<synchronous>, transform_indices = @transform_13, window_bounds = array<i64: 1, 512>}, {pipeline_mode = #tpu.pipeline_mode<synchronous>, transform_indices = @transform_14, window_bounds = array<i64: 128, 128>}, {pipeline_mode = #tpu.pipeline_mode<synchronous>, transform_indices = @transform_15, window_bounds = array<i64: 1, 128>}, {pipeline_mode = #tpu.pipeline_mode<synchronous>, transform_indices = @transform_16, window_bounds = array<i64: 1, 128>}, {pipeline_mode = #tpu.pipeline_mode<synchronous>, transform_indices = @transform_17, window_bounds = array<i64: 1, 128>}, {pipeline_mode = #tpu.pipeline_mode<synchronous>, transform_indices = @transform_18, window_bounds = array<i64: 128, 128>}, {pipeline_mode = #tpu.pipeline_mode<synchronous>, transform_indices = @transform_19, window_bounds = array<i64: 1, 128>}, {transform_indices = @transform_20, window_bounds = array<i64: 1, 8, 128>}]} {
    %c0 = arith.constant 0 : index
    %c0_0 = arith.constant 0 : index
    %c0_1 = arith.constant 0 : index
    %0 = vector.load %arg1[%c0, %c0_0, %c0_1] : memref<1x8x128xf32, #tpu.memory_space<vmem>>, vector<1x8x128xf32>
    %1 = vector.shape_cast %0 : vector<1x8x128xf32> to vector<8x128xf32>
    %c0_2 = arith.constant 0 : index
    %c0_3 = arith.constant 0 : index
    %2 = vector.load %arg3[%c0_2, %c0_3] : memref<128x128xf32, #tpu.memory_space<vmem>>, vector<128x128xf32>
    %cst = arith.constant dense<0.000000e+00> : vector<8x128xf32>
    %3 = tpu.matmul %1, %2, %cst {dimension_numbers = #tpu.dot_dimension_numbers<[1], [0], [0], [1], [0, 0, 1, 1], [], []>} : vector<8x128xf32>, vector<128x128xf32>, vector<8x128xf32> -> vector<8x128xf32>
    %c0_4 = arith.constant 0 : index
    %c0_5 = arith.constant 0 : index
    %4 = vector.load %arg4[%c0_4, %c0_5] : memref<1x128xf32, #tpu.memory_space<vmem>>, vector<1x128xf32>
    %5 = vector.broadcast %4 : vector<1x128xf32> to vector<8x128xf32>
    %6 = arith.addf %3, %5 : vector<8x128xf32>
    %c0_6 = arith.constant 0 : index
    %c0_7 = arith.constant 0 : index
    %7 = vector.load %arg5[%c0_6, %c0_7] : memref<1x128xf32, #tpu.memory_space<vmem>>, vector<1x128xf32>
    %c0_8 = arith.constant 0 : index
    %c0_9 = arith.constant 0 : index
    %8 = vector.load %arg6[%c0_8, %c0_9] : memref<1x128xf32, #tpu.memory_space<vmem>>, vector<1x128xf32>
    %9 = tpu.iota {dimensions = array<i32: 1>} : vector<8x128xi32>
    %cst_10 = arith.constant dense<0.000000e+00> : vector<8xf32>
    %10 = vector.multi_reduction <add>, %6, %cst_10 [1] : vector<8x128xf32> to vector<8xf32>
    %11 = vector.shape_cast %10 : vector<8xf32> to vector<8x1xf32>
    %cst_11 = arith.constant 3.125000e-02 : f32
    %12 = vector.broadcast %cst_11 : f32 to vector<8x1xf32>
    %13 = arith.mulf %11, %12 : vector<8x1xf32>
    %14 = vector.broadcast %13 : vector<8x1xf32> to vector<8x128xf32>
    %15 = arith.subf %6, %14 : vector<8x128xf32>
    %c32_i32 = arith.constant 32 : i32
    %16 = vector.broadcast %c32_i32 : i32 to vector<8x128xi32>
    %17 = arith.cmpi slt, %9, %16 : vector<8x128xi32>
    %cst_12 = arith.constant 0.000000e+00 : f32
    %18 = vector.broadcast %cst_12 : f32 to vector<8x128xf32>
    %19 = arith.select %17, %15, %18 : vector<8x128xi1>, vector<8x128xf32>
    %20 = arith.mulf %19, %19 : vector<8x128xf32>
    %cst_13 = arith.constant dense<0.000000e+00> : vector<8xf32>
    %21 = vector.multi_reduction <add>, %20, %cst_13 [1] : vector<8x128xf32> to vector<8xf32>
    %22 = vector.shape_cast %21 : vector<8xf32> to vector<8x1xf32>
    %cst_14 = arith.constant 3.125000e-02 : f32
    %23 = vector.broadcast %cst_14 : f32 to vector<8x1xf32>
    %24 = arith.mulf %22, %23 : vector<8x1xf32>
    %cst_15 = arith.constant 9.99999974E-6 : f32
    %25 = vector.broadcast %cst_15 : f32 to vector<8x1xf32>
    %26 = arith.addf %24, %25 : vector<8x1xf32>
    %27 = math.rsqrt %26 : vector<8x1xf32>
    %28 = vector.broadcast %27 : vector<8x1xf32> to vector<8x128xf32>
    %29 = arith.mulf %15, %28 : vector<8x128xf32>
    %30 = vector.broadcast %7 : vector<1x128xf32> to vector<8x128xf32>
    %31 = arith.mulf %29, %30 : vector<8x128xf32>
    %32 = vector.broadcast %8 : vector<1x128xf32> to vector<8x128xf32>
    %33 = arith.addf %31, %32 : vector<8x128xf32>
    %cst_16 = arith.constant 0.000000e+00 : f32
    %34 = vector.broadcast %cst_16 : f32 to vector<8x128xf32>
    %35 = arith.maximumf %33, %34 : vector<8x128xf32>
    %c0_17 = arith.constant 0 : index
    %c0_18 = arith.constant 0 : index
    %36 = vector.load %arg7[%c0_17, %c0_18] : memref<128x128xf32, #tpu.memory_space<vmem>>, vector<128x128xf32>
    %cst_19 = arith.constant dense<0.000000e+00> : vector<8x128xf32>
    %37 = tpu.matmul %35, %36, %cst_19 {dimension_numbers = #tpu.dot_dimension_numbers<[1], [0], [0], [1], [0, 0, 1, 1], [], []>} : vector<8x128xf32>, vector<128x128xf32>, vector<8x128xf32> -> vector<8x128xf32>
    %c0_20 = arith.constant 0 : index
    %c0_21 = arith.constant 0 : index
    %c0_22 = arith.constant 0 : index
    %38 = vector.load %arg2[%c0_20, %c0_21, %c0_22] : memref<1x8x128xf32, #tpu.memory_space<vmem>>, vector<1x8x128xf32>
    %39 = vector.shape_cast %38 : vector<1x8x128xf32> to vector<8x128xf32>
    %c0_23 = arith.constant 0 : index
    %c0_24 = arith.constant 0 : index
    %40 = vector.load %arg8[%c0_23, %c0_24] : memref<128x128xf32, #tpu.memory_space<vmem>>, vector<128x128xf32>
    %cst_25 = arith.constant dense<0.000000e+00> : vector<8x128xf32>
    %41 = tpu.matmul %39, %40, %cst_25 {dimension_numbers = #tpu.dot_dimension_numbers<[1], [0], [0], [1], [0, 0, 1, 1], [], []>} : vector<8x128xf32>, vector<128x128xf32>, vector<8x128xf32> -> vector<8x128xf32>
    %42 = arith.addf %37, %41 : vector<8x128xf32>
    %c0_26 = arith.constant 0 : index
    %c0_27 = arith.constant 0 : index
    %43 = vector.load %arg9[%c0_26, %c0_27] : memref<1x128xf32, #tpu.memory_space<vmem>>, vector<1x128xf32>
    %44 = vector.broadcast %43 : vector<1x128xf32> to vector<8x128xf32>
    %45 = arith.addf %42, %44 : vector<8x128xf32>
    %c0_28 = arith.constant 0 : index
    %c0_29 = arith.constant 0 : index
    %46 = vector.load %arg10[%c0_28, %c0_29] : memref<1x128xf32, #tpu.memory_space<vmem>>, vector<1x128xf32>
    %c0_30 = arith.constant 0 : index
    %c0_31 = arith.constant 0 : index
    %47 = vector.load %arg11[%c0_30, %c0_31] : memref<1x128xf32, #tpu.memory_space<vmem>>, vector<1x128xf32>
    %48 = tpu.iota {dimensions = array<i32: 1>} : vector<8x128xi32>
    %cst_32 = arith.constant dense<0.000000e+00> : vector<8xf32>
    %49 = vector.multi_reduction <add>, %45, %cst_32 [1] : vector<8x128xf32> to vector<8xf32>
    %50 = vector.shape_cast %49 : vector<8xf32> to vector<8x1xf32>
    %cst_33 = arith.constant 1.562500e-02 : f32
    %51 = vector.broadcast %cst_33 : f32 to vector<8x1xf32>
    %52 = arith.mulf %50, %51 : vector<8x1xf32>
    %53 = vector.broadcast %52 : vector<8x1xf32> to vector<8x128xf32>
    %54 = arith.subf %45, %53 : vector<8x128xf32>
    %c64_i32 = arith.constant 64 : i32
    %55 = vector.broadcast %c64_i32 : i32 to vector<8x128xi32>
    %56 = arith.cmpi slt, %48, %55 : vector<8x128xi32>
    %cst_34 = arith.constant 0.000000e+00 : f32
    %57 = vector.broadcast %cst_34 : f32 to vector<8x128xf32>
    %58 = arith.select %56, %54, %57 : vector<8x128xi1>, vector<8x128xf32>
    %59 = arith.mulf %58, %58 : vector<8x128xf32>
    %cst_35 = arith.constant dense<0.000000e+00> : vector<8xf32>
    %60 = vector.multi_reduction <add>, %59, %cst_35 [1] : vector<8x128xf32> to vector<8xf32>
    %61 = vector.shape_cast %60 : vector<8xf32> to vector<8x1xf32>
    %cst_36 = arith.constant 1.562500e-02 : f32
    %62 = vector.broadcast %cst_36 : f32 to vector<8x1xf32>
    %63 = arith.mulf %61, %62 : vector<8x1xf32>
    %cst_37 = arith.constant 9.99999974E-6 : f32
    %64 = vector.broadcast %cst_37 : f32 to vector<8x1xf32>
    %65 = arith.addf %63, %64 : vector<8x1xf32>
    %66 = math.rsqrt %65 : vector<8x1xf32>
    %67 = vector.broadcast %66 : vector<8x1xf32> to vector<8x128xf32>
    %68 = arith.mulf %54, %67 : vector<8x128xf32>
    %69 = vector.broadcast %46 : vector<1x128xf32> to vector<8x128xf32>
    %70 = arith.mulf %68, %69 : vector<8x128xf32>
    %71 = vector.broadcast %47 : vector<1x128xf32> to vector<8x128xf32>
    %72 = arith.addf %70, %71 : vector<8x128xf32>
    %c0_38 = arith.constant 0 : index
    %c0_39 = arith.constant 0 : index
    %73 = vector.load %arg12[%c0_38, %c0_39] : memref<128x512xf32, #tpu.memory_space<vmem>>, vector<128x512xf32>
    %cst_40 = arith.constant dense<0.000000e+00> : vector<8x512xf32>
    %74 = tpu.matmul %72, %73, %cst_40 {dimension_numbers = #tpu.dot_dimension_numbers<[1], [0], [0], [1], [0, 0, 1, 1], [], []>} : vector<8x128xf32>, vector<128x512xf32>, vector<8x512xf32> -> vector<8x512xf32>
    %c0_41 = arith.constant 0 : index
    %c0_42 = arith.constant 0 : index
    %75 = vector.load %arg14[%c0_41, %c0_42] : memref<1x512xf32, #tpu.memory_space<vmem>>, vector<1x512xf32>
    %76 = vector.broadcast %75 : vector<1x512xf32> to vector<8x512xf32>
    %77 = arith.addf %74, %76 : vector<8x512xf32>
    %c0_43 = arith.constant 0 : index
    %c0_44 = arith.constant 0 : index
    %78 = vector.load %arg13[%c0_43, %c0_44] : memref<128x512xf32, #tpu.memory_space<vmem>>, vector<128x512xf32>
    %cst_45 = arith.constant 0.000000e+00 : f32
    %79 = vector.broadcast %cst_45 : f32 to vector<1x128xf32>
    %cst_46 = arith.constant 0.000000e+00 : f32
    %80 = vector.broadcast %cst_46 : f32 to vector<1x128xf32>
    %81 = vector.extract_strided_slice %77 {offsets = [0, 0], sizes = [1, 512], strides = [1, 1]} : vector<8x512xf32> to vector<1x512xf32>
    %cst_47 = arith.constant dense<0.000000e+00> : vector<1x512xf32>
    %82 = tpu.matmul %79, %78, %cst_47 {dimension_numbers = #tpu.dot_dimension_numbers<[1], [0], [0], [1], [0, 0, 1, 1], [], []>} : vector<1x128xf32>, vector<128x512xf32>, vector<1x512xf32> -> vector<1x512xf32>
    %83 = arith.addf %81, %82 : vector<1x512xf32>
    %84 = vector.extract_strided_slice %83 {offsets = [0, 0], sizes = [1, 384], strides = [1, 1]} : vector<1x512xf32> to vector<1x384xf32>
    %85 = arith.negf %84 : vector<1x384xf32>
    %86 = math.exp %85 : vector<1x384xf32>
    %cst_48 = arith.constant 1.000000e+00 : f32
    %87 = vector.broadcast %cst_48 : f32 to vector<1x384xf32>
    %88 = arith.addf %87, %86 : vector<1x384xf32>
    %89 = arith.divf %87, %88 : vector<1x384xf32>
    %90 = vector.extract_strided_slice %89 {offsets = [0, 0], sizes = [1, 128], strides = [1, 1]} : vector<1x384xf32> to vector<1x128xf32>
    %91 = vector.extract_strided_slice %89 {offsets = [0, 128], sizes = [1, 128], strides = [1, 1]} : vector<1x384xf32> to vector<1x128xf32>
    %92 = vector.extract_strided_slice %89 {offsets = [0, 256], sizes = [1, 128], strides = [1, 1]} : vector<1x384xf32> to vector<1x128xf32>
    %93 = vector.extract_strided_slice %83 {offsets = [0, 384], sizes = [1, 128], strides = [1, 1]} : vector<1x512xf32> to vector<1x128xf32>
    %94 = math.tanh %93 : vector<1x128xf32>
    %95 = arith.mulf %91, %80 : vector<1x128xf32>
    %96 = arith.mulf %90, %94 : vector<1x128xf32>
    %97 = arith.addf %95, %96 : vector<1x128xf32>
    %98 = math.tanh %97 : vector<1x128xf32>
    %99 = arith.mulf %92, %98 : vector<1x128xf32>
    %100 = vector.extract_strided_slice %77 {offsets = [1, 0], sizes = [1, 512], strides = [1, 1]} : vector<8x512xf32> to vector<1x512xf32>
    %cst_49 = arith.constant dense<0.000000e+00> : vector<1x512xf32>
    %101 = tpu.matmul %99, %78, %cst_49 {dimension_numbers = #tpu.dot_dimension_numbers<[1], [0], [0], [1], [0, 0, 1, 1], [], []>} : vector<1x128xf32>, vector<128x512xf32>, vector<1x512xf32> -> vector<1x512xf32>
    %102 = arith.addf %100, %101 : vector<1x512xf32>
    %103 = vector.extract_strided_slice %102 {offsets = [0, 0], sizes = [1, 384], strides = [1, 1]} : vector<1x512xf32> to vector<1x384xf32>
    %104 = arith.negf %103 : vector<1x384xf32>
    %105 = math.exp %104 : vector<1x384xf32>
    %cst_50 = arith.constant 1.000000e+00 : f32
    %106 = vector.broadcast %cst_50 : f32 to vector<1x384xf32>
    %107 = arith.addf %106, %105 : vector<1x384xf32>
    %108 = arith.divf %106, %107 : vector<1x384xf32>
    %109 = vector.extract_strided_slice %108 {offsets = [0, 0], sizes = [1, 128], strides = [1, 1]} : vector<1x384xf32> to vector<1x128xf32>
    %110 = vector.extract_strided_slice %108 {offsets = [0, 128], sizes = [1, 128], strides = [1, 1]} : vector<1x384xf32> to vector<1x128xf32>
    %111 = vector.extract_strided_slice %108 {offsets = [0, 256], sizes = [1, 128], strides = [1, 1]} : vector<1x384xf32> to vector<1x128xf32>
    %112 = vector.extract_strided_slice %102 {offsets = [0, 384], sizes = [1, 128], strides = [1, 1]} : vector<1x512xf32> to vector<1x128xf32>
    %113 = math.tanh %112 : vector<1x128xf32>
    %114 = arith.mulf %110, %97 : vector<1x128xf32>
    %115 = arith.mulf %109, %113 : vector<1x128xf32>
    %116 = arith.addf %114, %115 : vector<1x128xf32>
    %117 = math.tanh %116 : vector<1x128xf32>
    %118 = arith.mulf %111, %117 : vector<1x128xf32>
    %119 = vector.extract_strided_slice %77 {offsets = [2, 0], sizes = [1, 512], strides = [1, 1]} : vector<8x512xf32> to vector<1x512xf32>
    %cst_51 = arith.constant dense<0.000000e+00> : vector<1x512xf32>
    %120 = tpu.matmul %118, %78, %cst_51 {dimension_numbers = #tpu.dot_dimension_numbers<[1], [0], [0], [1], [0, 0, 1, 1], [], []>} : vector<1x128xf32>, vector<128x512xf32>, vector<1x512xf32> -> vector<1x512xf32>
    %121 = arith.addf %119, %120 : vector<1x512xf32>
    %122 = vector.extract_strided_slice %121 {offsets = [0, 0], sizes = [1, 384], strides = [1, 1]} : vector<1x512xf32> to vector<1x384xf32>
    %123 = arith.negf %122 : vector<1x384xf32>
    %124 = math.exp %123 : vector<1x384xf32>
    %cst_52 = arith.constant 1.000000e+00 : f32
    %125 = vector.broadcast %cst_52 : f32 to vector<1x384xf32>
    %126 = arith.addf %125, %124 : vector<1x384xf32>
    %127 = arith.divf %125, %126 : vector<1x384xf32>
    %128 = vector.extract_strided_slice %127 {offsets = [0, 0], sizes = [1, 128], strides = [1, 1]} : vector<1x384xf32> to vector<1x128xf32>
    %129 = vector.extract_strided_slice %127 {offsets = [0, 128], sizes = [1, 128], strides = [1, 1]} : vector<1x384xf32> to vector<1x128xf32>
    %130 = vector.extract_strided_slice %127 {offsets = [0, 256], sizes = [1, 128], strides = [1, 1]} : vector<1x384xf32> to vector<1x128xf32>
    %131 = vector.extract_strided_slice %121 {offsets = [0, 384], sizes = [1, 128], strides = [1, 1]} : vector<1x512xf32> to vector<1x128xf32>
    %132 = math.tanh %131 : vector<1x128xf32>
    %133 = arith.mulf %129, %116 : vector<1x128xf32>
    %134 = arith.mulf %128, %132 : vector<1x128xf32>
    %135 = arith.addf %133, %134 : vector<1x128xf32>
    %136 = math.tanh %135 : vector<1x128xf32>
    %137 = arith.mulf %130, %136 : vector<1x128xf32>
    %138 = vector.extract_strided_slice %77 {offsets = [3, 0], sizes = [1, 512], strides = [1, 1]} : vector<8x512xf32> to vector<1x512xf32>
    %cst_53 = arith.constant dense<0.000000e+00> : vector<1x512xf32>
    %139 = tpu.matmul %137, %78, %cst_53 {dimension_numbers = #tpu.dot_dimension_numbers<[1], [0], [0], [1], [0, 0, 1, 1], [], []>} : vector<1x128xf32>, vector<128x512xf32>, vector<1x512xf32> -> vector<1x512xf32>
    %140 = arith.addf %138, %139 : vector<1x512xf32>
    %141 = vector.extract_strided_slice %140 {offsets = [0, 0], sizes = [1, 384], strides = [1, 1]} : vector<1x512xf32> to vector<1x384xf32>
    %142 = arith.negf %141 : vector<1x384xf32>
    %143 = math.exp %142 : vector<1x384xf32>
    %cst_54 = arith.constant 1.000000e+00 : f32
    %144 = vector.broadcast %cst_54 : f32 to vector<1x384xf32>
    %145 = arith.addf %144, %143 : vector<1x384xf32>
    %146 = arith.divf %144, %145 : vector<1x384xf32>
    %147 = vector.extract_strided_slice %146 {offsets = [0, 0], sizes = [1, 128], strides = [1, 1]} : vector<1x384xf32> to vector<1x128xf32>
    %148 = vector.extract_strided_slice %146 {offsets = [0, 128], sizes = [1, 128], strides = [1, 1]} : vector<1x384xf32> to vector<1x128xf32>
    %149 = vector.extract_strided_slice %146 {offsets = [0, 256], sizes = [1, 128], strides = [1, 1]} : vector<1x384xf32> to vector<1x128xf32>
    %150 = vector.extract_strided_slice %140 {offsets = [0, 384], sizes = [1, 128], strides = [1, 1]} : vector<1x512xf32> to vector<1x128xf32>
    %151 = math.tanh %150 : vector<1x128xf32>
    %152 = arith.mulf %148, %135 : vector<1x128xf32>
    %153 = arith.mulf %147, %151 : vector<1x128xf32>
    %154 = arith.addf %152, %153 : vector<1x128xf32>
    %155 = math.tanh %154 : vector<1x128xf32>
    %156 = arith.mulf %149, %155 : vector<1x128xf32>
    %157 = vector.extract_strided_slice %77 {offsets = [4, 0], sizes = [1, 512], strides = [1, 1]} : vector<8x512xf32> to vector<1x512xf32>
    %cst_55 = arith.constant dense<0.000000e+00> : vector<1x512xf32>
    %158 = tpu.matmul %156, %78, %cst_55 {dimension_numbers = #tpu.dot_dimension_numbers<[1], [0], [0], [1], [0, 0, 1, 1], [], []>} : vector<1x128xf32>, vector<128x512xf32>, vector<1x512xf32> -> vector<1x512xf32>
    %159 = arith.addf %157, %158 : vector<1x512xf32>
    %160 = vector.extract_strided_slice %159 {offsets = [0, 0], sizes = [1, 384], strides = [1, 1]} : vector<1x512xf32> to vector<1x384xf32>
    %161 = arith.negf %160 : vector<1x384xf32>
    %162 = math.exp %161 : vector<1x384xf32>
    %cst_56 = arith.constant 1.000000e+00 : f32
    %163 = vector.broadcast %cst_56 : f32 to vector<1x384xf32>
    %164 = arith.addf %163, %162 : vector<1x384xf32>
    %165 = arith.divf %163, %164 : vector<1x384xf32>
    %166 = vector.extract_strided_slice %165 {offsets = [0, 0], sizes = [1, 128], strides = [1, 1]} : vector<1x384xf32> to vector<1x128xf32>
    %167 = vector.extract_strided_slice %165 {offsets = [0, 128], sizes = [1, 128], strides = [1, 1]} : vector<1x384xf32> to vector<1x128xf32>
    %168 = vector.extract_strided_slice %165 {offsets = [0, 256], sizes = [1, 128], strides = [1, 1]} : vector<1x384xf32> to vector<1x128xf32>
    %169 = vector.extract_strided_slice %159 {offsets = [0, 384], sizes = [1, 128], strides = [1, 1]} : vector<1x512xf32> to vector<1x128xf32>
    %170 = math.tanh %169 : vector<1x128xf32>
    %171 = arith.mulf %167, %154 : vector<1x128xf32>
    %172 = arith.mulf %166, %170 : vector<1x128xf32>
    %173 = arith.addf %171, %172 : vector<1x128xf32>
    %174 = math.tanh %173 : vector<1x128xf32>
    %175 = arith.mulf %168, %174 : vector<1x128xf32>
    %176 = vector.extract_strided_slice %77 {offsets = [5, 0], sizes = [1, 512], strides = [1, 1]} : vector<8x512xf32> to vector<1x512xf32>
    %cst_57 = arith.constant dense<0.000000e+00> : vector<1x512xf32>
    %177 = tpu.matmul %175, %78, %cst_57 {dimension_numbers = #tpu.dot_dimension_numbers<[1], [0], [0], [1], [0, 0, 1, 1], [], []>} : vector<1x128xf32>, vector<128x512xf32>, vector<1x512xf32> -> vector<1x512xf32>
    %178 = arith.addf %176, %177 : vector<1x512xf32>
    %179 = vector.extract_strided_slice %178 {offsets = [0, 0], sizes = [1, 384], strides = [1, 1]} : vector<1x512xf32> to vector<1x384xf32>
    %180 = arith.negf %179 : vector<1x384xf32>
    %181 = math.exp %180 : vector<1x384xf32>
    %cst_58 = arith.constant 1.000000e+00 : f32
    %182 = vector.broadcast %cst_58 : f32 to vector<1x384xf32>
    %183 = arith.addf %182, %181 : vector<1x384xf32>
    %184 = arith.divf %182, %183 : vector<1x384xf32>
    %185 = vector.extract_strided_slice %184 {offsets = [0, 0], sizes = [1, 128], strides = [1, 1]} : vector<1x384xf32> to vector<1x128xf32>
    %186 = vector.extract_strided_slice %184 {offsets = [0, 128], sizes = [1, 128], strides = [1, 1]} : vector<1x384xf32> to vector<1x128xf32>
    %187 = vector.extract_strided_slice %184 {offsets = [0, 256], sizes = [1, 128], strides = [1, 1]} : vector<1x384xf32> to vector<1x128xf32>
    %188 = vector.extract_strided_slice %178 {offsets = [0, 384], sizes = [1, 128], strides = [1, 1]} : vector<1x512xf32> to vector<1x128xf32>
    %189 = math.tanh %188 : vector<1x128xf32>
    %190 = arith.mulf %186, %173 : vector<1x128xf32>
    %191 = arith.mulf %185, %189 : vector<1x128xf32>
    %192 = arith.addf %190, %191 : vector<1x128xf32>
    %193 = math.tanh %192 : vector<1x128xf32>
    %194 = arith.mulf %187, %193 : vector<1x128xf32>
    %195 = vector.extract_strided_slice %77 {offsets = [6, 0], sizes = [1, 512], strides = [1, 1]} : vector<8x512xf32> to vector<1x512xf32>
    %cst_59 = arith.constant dense<0.000000e+00> : vector<1x512xf32>
    %196 = tpu.matmul %194, %78, %cst_59 {dimension_numbers = #tpu.dot_dimension_numbers<[1], [0], [0], [1], [0, 0, 1, 1], [], []>} : vector<1x128xf32>, vector<128x512xf32>, vector<1x512xf32> -> vector<1x512xf32>
    %197 = arith.addf %195, %196 : vector<1x512xf32>
    %198 = vector.extract_strided_slice %197 {offsets = [0, 0], sizes = [1, 384], strides = [1, 1]} : vector<1x512xf32> to vector<1x384xf32>
    %199 = arith.negf %198 : vector<1x384xf32>
    %200 = math.exp %199 : vector<1x384xf32>
    %cst_60 = arith.constant 1.000000e+00 : f32
    %201 = vector.broadcast %cst_60 : f32 to vector<1x384xf32>
    %202 = arith.addf %201, %200 : vector<1x384xf32>
    %203 = arith.divf %201, %202 : vector<1x384xf32>
    %204 = vector.extract_strided_slice %203 {offsets = [0, 0], sizes = [1, 128], strides = [1, 1]} : vector<1x384xf32> to vector<1x128xf32>
    %205 = vector.extract_strided_slice %203 {offsets = [0, 128], sizes = [1, 128], strides = [1, 1]} : vector<1x384xf32> to vector<1x128xf32>
    %206 = vector.extract_strided_slice %203 {offsets = [0, 256], sizes = [1, 128], strides = [1, 1]} : vector<1x384xf32> to vector<1x128xf32>
    %207 = vector.extract_strided_slice %197 {offsets = [0, 384], sizes = [1, 128], strides = [1, 1]} : vector<1x512xf32> to vector<1x128xf32>
    %208 = math.tanh %207 : vector<1x128xf32>
    %209 = arith.mulf %205, %192 : vector<1x128xf32>
    %210 = arith.mulf %204, %208 : vector<1x128xf32>
    %211 = arith.addf %209, %210 : vector<1x128xf32>
    %212 = math.tanh %211 : vector<1x128xf32>
    %213 = arith.mulf %206, %212 : vector<1x128xf32>
    %214 = vector.extract_strided_slice %77 {offsets = [7, 0], sizes = [1, 512], strides = [1, 1]} : vector<8x512xf32> to vector<1x512xf32>
    %cst_61 = arith.constant dense<0.000000e+00> : vector<1x512xf32>
    %215 = tpu.matmul %213, %78, %cst_61 {dimension_numbers = #tpu.dot_dimension_numbers<[1], [0], [0], [1], [0, 0, 1, 1], [], []>} : vector<1x128xf32>, vector<128x512xf32>, vector<1x512xf32> -> vector<1x512xf32>
    %216 = arith.addf %214, %215 : vector<1x512xf32>
    %217 = vector.extract_strided_slice %216 {offsets = [0, 0], sizes = [1, 384], strides = [1, 1]} : vector<1x512xf32> to vector<1x384xf32>
    %218 = arith.negf %217 : vector<1x384xf32>
    %219 = math.exp %218 : vector<1x384xf32>
    %cst_62 = arith.constant 1.000000e+00 : f32
    %220 = vector.broadcast %cst_62 : f32 to vector<1x384xf32>
    %221 = arith.addf %220, %219 : vector<1x384xf32>
    %222 = arith.divf %220, %221 : vector<1x384xf32>
    %223 = vector.extract_strided_slice %222 {offsets = [0, 0], sizes = [1, 128], strides = [1, 1]} : vector<1x384xf32> to vector<1x128xf32>
    %224 = vector.extract_strided_slice %222 {offsets = [0, 128], sizes = [1, 128], strides = [1, 1]} : vector<1x384xf32> to vector<1x128xf32>
    %225 = vector.extract_strided_slice %222 {offsets = [0, 256], sizes = [1, 128], strides = [1, 1]} : vector<1x384xf32> to vector<1x128xf32>
    %226 = vector.extract_strided_slice %216 {offsets = [0, 384], sizes = [1, 128], strides = [1, 1]} : vector<1x512xf32> to vector<1x128xf32>
    %227 = math.tanh %226 : vector<1x128xf32>
    %228 = arith.mulf %224, %211 : vector<1x128xf32>
    %229 = arith.mulf %223, %227 : vector<1x128xf32>
    %230 = arith.addf %228, %229 : vector<1x128xf32>
    %231 = math.tanh %230 : vector<1x128xf32>
    %232 = arith.mulf %225, %231 : vector<1x128xf32>
    %233 = tpu.concatenate %99, %118, %137, %156, %175, %194, %213, %232 in 0 : vector<1x128xf32>, vector<1x128xf32>, vector<1x128xf32>, vector<1x128xf32>, vector<1x128xf32>, vector<1x128xf32>, vector<1x128xf32>, vector<1x128xf32> -> vector<8x128xf32>
    %c0_63 = arith.constant 0 : index
    %c0_64 = arith.constant 0 : index
    %234 = vector.load %arg15[%c0_63, %c0_64] : memref<128x128xf32, #tpu.memory_space<vmem>>, vector<128x128xf32>
    %cst_65 = arith.constant dense<0.000000e+00> : vector<8x128xf32>
    %235 = tpu.matmul %233, %234, %cst_65 {dimension_numbers = #tpu.dot_dimension_numbers<[1], [0], [0], [1], [0, 0, 1, 1], [], []>} : vector<8x128xf32>, vector<128x128xf32>, vector<8x128xf32> -> vector<8x128xf32>
    %c0_66 = arith.constant 0 : index
    %c0_67 = arith.constant 0 : index
    %236 = vector.load %arg16[%c0_66, %c0_67] : memref<1x128xf32, #tpu.memory_space<vmem>>, vector<1x128xf32>
    %237 = vector.broadcast %236 : vector<1x128xf32> to vector<8x128xf32>
    %238 = arith.addf %235, %237 : vector<8x128xf32>
    %c0_68 = arith.constant 0 : index
    %c0_69 = arith.constant 0 : index
    %239 = vector.load %arg17[%c0_68, %c0_69] : memref<1x128xf32, #tpu.memory_space<vmem>>, vector<1x128xf32>
    %c0_70 = arith.constant 0 : index
    %c0_71 = arith.constant 0 : index
    %240 = vector.load %arg18[%c0_70, %c0_71] : memref<1x128xf32, #tpu.memory_space<vmem>>, vector<1x128xf32>
    %241 = tpu.iota {dimensions = array<i32: 1>} : vector<8x128xi32>
    %cst_72 = arith.constant dense<0.000000e+00> : vector<8xf32>
    %242 = vector.multi_reduction <add>, %238, %cst_72 [1] : vector<8x128xf32> to vector<8xf32>
    %243 = vector.shape_cast %242 : vector<8xf32> to vector<8x1xf32>
    %cst_73 = arith.constant 3.125000e-02 : f32
    %244 = vector.broadcast %cst_73 : f32 to vector<8x1xf32>
    %245 = arith.mulf %243, %244 : vector<8x1xf32>
    %246 = vector.broadcast %245 : vector<8x1xf32> to vector<8x128xf32>
    %247 = arith.subf %238, %246 : vector<8x128xf32>
    %c32_i32_74 = arith.constant 32 : i32
    %248 = vector.broadcast %c32_i32_74 : i32 to vector<8x128xi32>
    %249 = arith.cmpi slt, %241, %248 : vector<8x128xi32>
    %cst_75 = arith.constant 0.000000e+00 : f32
    %250 = vector.broadcast %cst_75 : f32 to vector<8x128xf32>
    %251 = arith.select %249, %247, %250 : vector<8x128xi1>, vector<8x128xf32>
    %252 = arith.mulf %251, %251 : vector<8x128xf32>
    %cst_76 = arith.constant dense<0.000000e+00> : vector<8xf32>
    %253 = vector.multi_reduction <add>, %252, %cst_76 [1] : vector<8x128xf32> to vector<8xf32>
    %254 = vector.shape_cast %253 : vector<8xf32> to vector<8x1xf32>
    %cst_77 = arith.constant 3.125000e-02 : f32
    %255 = vector.broadcast %cst_77 : f32 to vector<8x1xf32>
    %256 = arith.mulf %254, %255 : vector<8x1xf32>
    %cst_78 = arith.constant 9.99999974E-6 : f32
    %257 = vector.broadcast %cst_78 : f32 to vector<8x1xf32>
    %258 = arith.addf %256, %257 : vector<8x1xf32>
    %259 = math.rsqrt %258 : vector<8x1xf32>
    %260 = vector.broadcast %259 : vector<8x1xf32> to vector<8x128xf32>
    %261 = arith.mulf %247, %260 : vector<8x128xf32>
    %262 = vector.broadcast %239 : vector<1x128xf32> to vector<8x128xf32>
    %263 = arith.mulf %261, %262 : vector<8x128xf32>
    %264 = vector.broadcast %240 : vector<1x128xf32> to vector<8x128xf32>
    %265 = arith.addf %263, %264 : vector<8x128xf32>
    %cst_79 = arith.constant 0.000000e+00 : f32
    %266 = vector.broadcast %cst_79 : f32 to vector<8x128xf32>
    %267 = arith.maximumf %265, %266 : vector<8x128xf32>
    %c0_80 = arith.constant 0 : index
    %c0_81 = arith.constant 0 : index
    %268 = vector.load %arg19[%c0_80, %c0_81] : memref<128x128xf32, #tpu.memory_space<vmem>>, vector<128x128xf32>
    %cst_82 = arith.constant dense<0.000000e+00> : vector<8x128xf32>
    %269 = tpu.matmul %267, %268, %cst_82 {dimension_numbers = #tpu.dot_dimension_numbers<[1], [0], [0], [1], [0, 0, 1, 1], [], []>} : vector<8x128xf32>, vector<128x128xf32>, vector<8x128xf32> -> vector<8x128xf32>
    %c0_83 = arith.constant 0 : index
    %c0_84 = arith.constant 0 : index
    %270 = vector.load %arg20[%c0_83, %c0_84] : memref<1x128xf32, #tpu.memory_space<vmem>>, vector<1x128xf32>
    %271 = vector.broadcast %270 : vector<1x128xf32> to vector<8x128xf32>
    %272 = arith.addf %269, %271 : vector<8x128xf32>
    %273 = math.tanh %272 : vector<8x128xf32>
    %c0_85 = arith.constant 0 : index
    %c0_86 = arith.constant 0 : index
    %c0_87 = arith.constant 0 : index
    %274 = vector.load %arg21[%c0_85, %c0_86, %c0_87] : memref<1x8x128xf32, #tpu.memory_space<vmem>>, vector<1x8x128xf32>
    %275 = vector.shape_cast %274 : vector<1x8x128xf32> to vector<8x128xf32>
    %276 = vector.shape_cast %273 : vector<8x128xf32> to vector<1x8x128xf32>
    tpu.vector_store %arg21[%c0_85, %c0_86, %c0_87], %276 {strides = array<i32>} : memref<1x8x128xf32, #tpu.memory_space<vmem>>, vector<1x8x128xf32>,
    return
  }
  func.func @transform_0(%arg0: i32) -> (i32, i32, i32) {
    %c0_i32 = arith.constant 0 : i32
    %c0_i32_0 = arith.constant 0 : i32
    %c0_i32_1 = arith.constant 0 : i32
    return %arg0, %c0_i32, %c0_i32_0 : i32, i32, i32
  }
  func.func @transform_1(%arg0: i32) -> (i32, i32, i32) {
    %c0_i32 = arith.constant 0 : i32
    %c0_i32_0 = arith.constant 0 : i32
    %c0_i32_1 = arith.constant 0 : i32
    return %arg0, %c0_i32, %c0_i32_0 : i32, i32, i32
  }
  func.func @transform_2(%arg0: i32) -> (i32, i32) {
    %c0_i32 = arith.constant 0 : i32
    %c0_i32_0 = arith.constant 0 : i32
    %c0_i32_1 = arith.constant 0 : i32
    return %c0_i32, %c0_i32_0 : i32, i32
  }
  func.func @transform_3(%arg0: i32) -> (i32, i32) {
    %c0_i32 = arith.constant 0 : i32
    %c0_i32_0 = arith.constant 0 : i32
    %c0_i32_1 = arith.constant 0 : i32
    return %c0_i32, %c0_i32_0 : i32, i32
  }
  func.func @transform_4(%arg0: i32) -> (i32, i32) {
    %c0_i32 = arith.constant 0 : i32
    %c0_i32_0 = arith.constant 0 : i32
    %c0_i32_1 = arith.constant 0 : i32
    return %c0_i32, %c0_i32_0 : i32, i32
  }
  func.func @transform_5(%arg0: i32) -> (i32, i32) {
    %c0_i32 = arith.constant 0 : i32
    %c0_i32_0 = arith.constant 0 : i32
    %c0_i32_1 = arith.constant 0 : i32
    return %c0_i32, %c0_i32_0 : i32, i32
  }
  func.func @transform_6(%arg0: i32) -> (i32, i32) {
    %c0_i32 = arith.constant 0 : i32
    %c0_i32_0 = arith.constant 0 : i32
    %c0_i32_1 = arith.constant 0 : i32
    return %c0_i32, %c0_i32_0 : i32, i32
  }
  func.func @transform_7(%arg0: i32) -> (i32, i32) {
    %c0_i32 = arith.constant 0 : i32
    %c0_i32_0 = arith.constant 0 : i32
    %c0_i32_1 = arith.constant 0 : i32
    return %c0_i32, %c0_i32_0 : i32, i32
  }
  func.func @transform_8(%arg0: i32) -> (i32, i32) {
    %c0_i32 = arith.constant 0 : i32
    %c0_i32_0 = arith.constant 0 : i32
    %c0_i32_1 = arith.constant 0 : i32
    return %c0_i32, %c0_i32_0 : i32, i32
  }
  func.func @transform_9(%arg0: i32) -> (i32, i32) {
    %c0_i32 = arith.constant 0 : i32
    %c0_i32_0 = arith.constant 0 : i32
    %c0_i32_1 = arith.constant 0 : i32
    return %c0_i32, %c0_i32_0 : i32, i32
  }
  func.func @transform_10(%arg0: i32) -> (i32, i32) {
    %c0_i32 = arith.constant 0 : i32
    %c0_i32_0 = arith.constant 0 : i32
    %c0_i32_1 = arith.constant 0 : i32
    return %c0_i32, %c0_i32_0 : i32, i32
  }
  func.func @transform_11(%arg0: i32) -> (i32, i32) {
    %c0_i32 = arith.constant 0 : i32
    %c0_i32_0 = arith.constant 0 : i32
    %c0_i32_1 = arith.constant 0 : i32
    return %c0_i32, %c0_i32_0 : i32, i32
  }
  func.func @transform_12(%arg0: i32) -> (i32, i32) {
    %c0_i32 = arith.constant 0 : i32
    %c0_i32_0 = arith.constant 0 : i32
    %c0_i32_1 = arith.constant 0 : i32
    return %c0_i32, %c0_i32_0 : i32, i32
  }
  func.func @transform_13(%arg0: i32) -> (i32, i32) {
    %c0_i32 = arith.constant 0 : i32
    %c0_i32_0 = arith.constant 0 : i32
    %c0_i32_1 = arith.constant 0 : i32
    return %c0_i32, %c0_i32_0 : i32, i32
  }
  func.func @transform_14(%arg0: i32) -> (i32, i32) {
    %c0_i32 = arith.constant 0 : i32
    %c0_i32_0 = arith.constant 0 : i32
    %c0_i32_1 = arith.constant 0 : i32
    return %c0_i32, %c0_i32_0 : i32, i32
  }
  func.func @transform_15(%arg0: i32) -> (i32, i32) {
    %c0_i32 = arith.constant 0 : i32
    %c0_i32_0 = arith.constant 0 : i32
    %c0_i32_1 = arith.constant 0 : i32
    return %c0_i32, %c0_i32_0 : i32, i32
  }
  func.func @transform_16(%arg0: i32) -> (i32, i32) {
    %c0_i32 = arith.constant 0 : i32
    %c0_i32_0 = arith.constant 0 : i32
    %c0_i32_1 = arith.constant 0 : i32
    return %c0_i32, %c0_i32_0 : i32, i32
  }
  func.func @transform_17(%arg0: i32) -> (i32, i32) {
    %c0_i32 = arith.constant 0 : i32
    %c0_i32_0 = arith.constant 0 : i32
    %c0_i32_1 = arith.constant 0 : i32
    return %c0_i32, %c0_i32_0 : i32, i32
  }
  func.func @transform_18(%arg0: i32) -> (i32, i32) {
    %c0_i32 = arith.constant 0 : i32
    %c0_i32_0 = arith.constant 0 : i32
    %c0_i32_1 = arith.constant 0 : i32
    return %c0_i32, %c0_i32_0 : i32, i32
  }
  func.func @transform_19(%arg0: i32) -> (i32, i32) {
    %c0_i32 = arith.constant 0 : i32
    %c0_i32_0 = arith.constant 0 : i32
    %c0_i32_1 = arith.constant 0 : i32
    return %c0_i32, %c0_i32_0 : i32, i32
  }
  func.func @transform_20(%arg0: i32) -> (i32, i32, i32) {
    %c0_i32 = arith.constant 0 : i32
    %c0_i32_0 = arith.constant 0 : i32
    %c0_i32_1 = arith.constant 0 : i32
    return %arg0, %c0_i32, %c0_i32_0 : i32, i32, i32
  }
}

</mosaic_0001>

<bundles_post_ra>
// kernel: forward.1
= control target key start
LH: loop header
LB: loop body
LE: loop exit
PB: predicated region body
PF: predicated region fallthrough
CT: control target
= control target key end

     0   :  { %s5967_s0 = inlined_call_operand.vmem [shape: f32[2,8,128], index: 0, kind: input, shape index: {}]   ;;  %s5968_s1 = inlined_call_operand.vmem [shape: f32[2,8,128], index: 1, kind: input, shape index: {}]   ;;  %s5969_s2 = inlined_call_operand.vmem [shape: f32[128,128], index: 2, kind: input, shape index: {}]   ;;  %s5970_s3 = inlined_call_operand.hbm [shape: f32[1,128], index: 3, kind: input, shape index: {}]   ;;  %s5971_s4 = inlined_call_operand.vmem [shape: f32[1,128], index: 4, kind: input, shape index: {}, may-alias: {4,16}]   ;;  %s5972_s5 = inlined_call_operand.vmem [shape: f32[1,128], index: 5, kind: input, shape index: {}, may-alias: {5,10,17}]   ;;  %s5973_s6 = inlined_call_operand.vmem [shape: f32[128,128], index: 6, kind: input, shape index: {}]   ;;  %s5974_s7 = inlined_call_operand.hbm [shape: f32[128,128], index: 7, kind: input, shape index: {}]   ;;  %s5975_s8 = inlined_call_operand.hbm [shape: f32[1,128], index: 8, kind: input, shape index: {}]   ;;  %s5976_s9 = inlined_call_operand.hbm [shape: f32[1,128], index: 9, kind: input, shape index: {}]   ;;  %s5977_s10 = inlined_call_operand.vmem [shape: f32[1,128], index: 10, kind: input, shape index: {}, may-alias: {5,10,17}]   ;;  %s5978_s11 = inlined_call_operand.hbm [shape: f32[128,512], index: 11, kind: input, shape index: {}]   ;;  %s5979_s12 = inlined_call_operand.hbm [shape: f32[128,512], index: 12, kind: input, shape index: {}]   ;;  %s5980_s13 = inlined_call_operand.hbm [shape: f32[1,512], index: 13, kind: input, shape index: {}]   ;;  %s5981_s14 = inlined_call_operand.hbm [shape: f32[128,128], index: 14, kind: input, shape index: {}]   ;;  %s5982_s15 = inlined_call_operand.hbm [shape: f32[1,128], index: 15, kind: input, shape index: {}]   ;;  %s5983_s16 = inlined_call_operand.vmem [shape: f32[1,128], index: 16, kind: input, shape index: {}, may-alias: {4,16}]   ;;  %s5984_s17 = inlined_call_operand.vmem [shape: f32[1,128], index: 17, kind: input, shape index: {}, may-alias: {5,10,17}]   ;;  %s5985_s18 = inlined_call_operand.hbm [shape: f32[128,128], index: 18, kind: input, shape index: {}]   ;;  %s5986_s19 = inlined_call_operand.hbm [shape: f32[1,128], index: 19, kind: input, shape index: {}]   ;;  %s5987_s20 = inlined_call_operand.vmem [shape: f32[2,8,128], index: 20, kind: output, shape index: {}]  }
   0x1   :  { %5997 = sst [smem:[#allocation26_spill]] %s5967_s0 }
   0x2   :  { %5998 = sst [smem:[#allocation27_spill]] %s5968_s1 }
   0x3   :  { %5999 = sst [smem:[#allocation28_spill]] %s5969_s2 }
   0x4   :  { %6000 = sst [smem:[#allocation29_spill]] %s5970_s3 }
   0x5   :  { %6001 = sst [smem:[#allocation30_spill]] %s5971_s4 }
   0x6   :  { %6002 = sst [smem:[#allocation31_spill]] %s5974_s7 }
   0x7   :  { %6003 = sst [smem:[#allocation32_spill]] %s5975_s8 }
   0x8   :  { %6004 = sst [smem:[#allocation33_spill]] %s5983_s16 }
   0x9   :  { %6005 = sst [smem:[#allocation34_spill]] %s5984_s17 }
   0xa   :  { %6006 = sst [smem:[#allocation35_spill]] %s5987_s20 }
   0xb   :  { %25 = vsyncpa [#allocation3], 0 }
   0xc   :  { %26 = vsyncpa [#allocation5], 0 }
   0xd   :  { %27 = vsyncpa [#allocation8], 0 }
   0xe   :  { %28 = vsyncpa [#allocation11], 0 }
   0xf   :  { %29 = vsyncpa [#allocation14], 0 }
  0x10   :  { %30 = vsyncpa [#allocation17], 0  ;;  %s5051_s1 = smov 0  }
  0x11 LB: > { %6007 = sst [smem:[#allocation25_spill]] %s4926_s1  ;;  %s4928_s22 = smov [#allocation4]   ;;  %s4926_s1 = sphi %s5051_s1, %s36_s1  }
  0x12   : > { %s532_s23 = sshll.u32 %s4928_s22, 4  ;;  %s5057_s24 = sadd.s32 4294967295, %s4926_s1   ;;  %s5062_s23 = int_to_ptr.vmem [resolvable:$true] %s532_s23 }
  0x13   : > { %p3306_p0 = scmp.ge.s32.totalorder %s4926_s1, 1  ;;  %p497_p1 = scmp.lt.s32.totalorder %s4926_s1, 3 }
  0x14   : > { %p5993_p2 = scmp.eq.s32.totalorder %s5057_s24, 0  ;;  %s4929_s25 = smov [#allocation7]  }
  0x15   : > { %p5064_p3 = pnand %p3306_p0, %p497_p1  ;;  %s557_s3 = sshll.u32 %s4929_s25, 4  ;;  %s5070_s3 = int_to_ptr.vmem [resolvable:$true] %s557_s3 }
  0x16   : > { %s4930_s27 = smov [#allocation10]   ;;  %s6010_s7 = sld [smem:[#allocation31_spill]] }
  0x17   : > { %s6008_s2 = scalar_select %p5064_p3, 1, 0 }
  0x18   : > { %p4370_p4 = pneg %p5064_p3  ;;  %s5078_s28 = sshll.u32 %s4930_s27, 4  ;;  %s584_s28 = int_to_ptr.vmem [resolvable:$true] %s5078_s28 }
  0x1a   : > { %p5074_p5 = pnand %p5993_p2, %p4370_p4 }
  0x1c   : > { %s4588_s30 = scalar_lea.hbm %s6010_s7, 2048  ;;  %p5088_p7 = pneg %p5074_p5 }
  0x1d   : > { %p4589_p6 = scmp.ne.s32.totalorder %s6010_s7, %s4588_s30  ;;  %p4595_p10 = scmp.lt.u32.totalorder %s4588_s30, %s6010_s7 }
  0x1f   : > { %p4591_p8 = pnand %p5088_p7, %p4589_p6 }
  0x21   : > { %p4592_p9 = pneg %p4591_p8 }
  0x23   : > { %p4597_p11 = pnand %p4595_p10, %p4592_p9 }
  0x25   : > { %4600 = shalt.err (!%p4597_p11)
}
  0x26   : > { %s4601_s4 = scalar_lea.vmem %s5062_s23, 2048  ;;  %p4609_p1 = scmp.lt.s32.totalorder %s5062_s23, %s5062_s23 }
  0x27   : > { %p4602_p12 = scmp.ne.s32.totalorder %s5062_s23, %s4601_s4  ;;  %p4610_p4 = scmp.lt.s32.totalorder %s4601_s4, %s4601_s4 }
  0x29   : > { %p4604_p13 = pnand %p4602_p12, %p5088_p7  ;;  %p4611_p6 = por %p4610_p4, %p4609_p1 }
  0x2b   : > { %p4605_p0 = pneg %p4604_p13 }
  0x2d   : > { %p4612_p8 = pnand %p4611_p6, %p4605_p0 }
  0x2f   : > { %4615 = shalt.err (!%p4612_p8)
}
  0x30   : > { %s5991_s29 = smov 128   ;;  %s4932_s30 = smov 8  }
  0x31   : > { %4376 = dma.hbm_to_vmem [thread:$0]  (!%p5074_p5), %s6010_s7, 2048, %s5062_s23, [#allocation5], %s5991_s29, %s5991_s29, %s4932_s30  }
  0x32   : > { %s4616_s4 = scalar_lea.hbm %s5976_s9, 16 }
  0x33   : > { %p4617_p9 = scmp.ne.s32.totalorder %s5976_s9, %s4616_s4  ;;  %p4623_p12 = scmp.lt.u32.totalorder %s4616_s4, %s5976_s9 }
  0x35   : > { %p4619_p10 = pnand %p4617_p9, %p5088_p7 }
  0x37   : > { %p4620_p11 = pneg %p4619_p10 }
  0x39   : > { %p4625_p13 = pnand %p4623_p12, %p4620_p11 }
  0x3b   : > { %4628 = shalt.err (!%p4625_p13)
}
  0x3c   : > { %s4629_s23 = scalar_lea.vmem %s5070_s3, 16  ;;  %s4636_s20 = scalar_lea.vmem %s5070_s3, 32 }
  0x3d   : > { %p4630_p0 = scmp.ne.s32.totalorder %s5070_s3, %s4629_s23  ;;  %p4637_p6 = scmp.lt.s32.totalorder %s5070_s3, %s5070_s3 }
  0x3e   : > { %p4638_p8 = scmp.lt.s32.totalorder %s4636_s20, %s4629_s23 }
  0x3f   : > { %p4632_p1 = pnand %p4630_p0, %p5088_p7 }
  0x40   : > { %p4639_p9 = por %p4638_p8, %p4637_p6 }
  0x41   : > { %p4633_p4 = pneg %p4632_p1 }
  0x43   : > { %p4640_p10 = pnand %p4639_p9, %p4633_p4 }
  0x45   : > { %4643 = shalt.err (!%p4640_p10)
}
  0x46   : > { %4382 = dma.hbm_to_vmem [thread:$0]  (!%p5074_p5), %s5976_s9, 16, %s5070_s3, [#allocation8]  }
  0x47   : > { %s4933_s1 = smov [#allocation13]   ;;  %s4644_s27 = scalar_lea.hbm %s5979_s12, 8192 }
  0x48   : > { %s607_s0 = sshll.u32 %s4933_s1, 4  ;;  %p4645_p11 = scmp.ne.s32.totalorder %s5979_s12, %s4644_s27  ;;  %s608_s0 = int_to_ptr.vmem [resolvable:$true] %s607_s0 }
  0x49   : > { %p4651_p0 = scmp.lt.u32.totalorder %s4644_s27, %s5979_s12 }
  0x4a   : > { %p4647_p12 = pnand %p4645_p11, %p5088_p7 }
  0x4c   : > { %p4648_p13 = pneg %p4647_p12 }
  0x4e   : > { %p4653_p1 = pnand %p4651_p0, %p4648_p13 }
  0x50   : > { %4656 = shalt.err (!%p4653_p1)
}
  0x51   : > { %s4657_s3 = scalar_lea.vmem %s584_s28, 8192  ;;  %p4665_p9 = scmp.lt.s32.totalorder %s584_s28, %s584_s28 }
  0x52   : > { %p4658_p4 = scmp.ne.s32.totalorder %s584_s28, %s4657_s3  ;;  %p4666_p10 = scmp.lt.s32.totalorder %s4657_s3, %s4657_s3 }
  0x54   : > { %p4660_p6 = pnand %p4658_p4, %p5088_p7  ;;  %p4667_p2 = por %p4666_p10, %p4665_p9 }
  0x56   : > { %p4661_p8 = pneg %p4660_p6 }
  0x58   : > { %p4668_p3 = pnand %p4667_p2, %p4661_p8 }
  0x5a   : > { %4671 = shalt.err (!%p4668_p3)
}
  0x5b   : > { %s5995_s16 = smov 512   ;;  %s5996_s17 = smov 32  }
  0x5c   : > { %4388 = dma.hbm_to_vmem [thread:$0]  (!%p5074_p5), %s5979_s12, 8192, %s584_s28, [#allocation11], %s5995_s16, %s5995_s16, %s5996_s17  }
  0x5d   : > { %s4672_s27 = scalar_lea.hbm %s5981_s14, 2048 }
  0x5e   : > { %p4673_p2 = scmp.ne.s32.totalorder %s5981_s14, %s4672_s27  ;;  %p4679_p12 = scmp.lt.u32.totalorder %s4672_s27, %s5981_s14 }
  0x60   : > { %p4675_p3 = pnand %p4673_p2, %p5088_p7 }
  0x62   : > { %p4676_p11 = pneg %p4675_p3 }
  0x64   : > { %p4681_p13 = pnand %p4679_p12, %p4676_p11 }
  0x66   : > { %4684 = shalt.err (!%p4681_p13)
}
  0x67   : > { %s4685_s29 = scalar_lea.vmem %s608_s0, 2048  ;;  %p4693_p6 = scmp.lt.s32.totalorder %s608_s0, %s608_s0 }
  0x68   : > { %p4686_p0 = scmp.ne.s32.totalorder %s608_s0, %s4685_s29  ;;  %p4694_p8 = scmp.lt.s32.totalorder %s4685_s29, %s4685_s29 }
  0x6a   : > { %p4688_p1 = pnand %p4686_p0, %p5088_p7  ;;  %p4695_p9 = por %p4694_p8, %p4693_p6 }
  0x6c   : > { %p4689_p4 = pneg %p4688_p1 }
  0x6e   : > { %p4696_p10 = pnand %p4695_p9, %p4689_p4 }
  0x70   : > { %4699 = shalt.err (!%p4696_p10)
}
  0x71   : > { %s6012_s28 = smov 128   ;;  %s4936_s25 = smov [#allocation16]  }
  0x72   : > { %4394 = dma.hbm_to_vmem [thread:$0]  (!%p5074_p5), %s5981_s14, 2048, %s608_s0, [#allocation14], %s6012_s28, %s6012_s28, %s4932_s30  }
  0x73   : > { %s637_s27 = sshll.u32 %s4936_s25, 4  ;;  %s4937_s4 = smov [#allocation2]   ;;  %s638_s27 = int_to_ptr.vmem [resolvable:$true] %s637_s27 }
  0x74   : > { %s513_s23 = sshll.u32 %s4937_s4, 4  ;;  %s4700_s29 = scalar_lea.hbm %s5985_s18, 2048  ;;  %s514_s23 = int_to_ptr.vmem [resolvable:$true] %s513_s23 }
  0x75   : > { %p4701_p2 = scmp.ne.s32.totalorder %s5985_s18, %s4700_s29  ;;  %p4707_p12 = scmp.lt.u32.totalorder %s4700_s29, %s5985_s18 }
  0x77   : > { %p4703_p3 = pnand %p4701_p2, %p5088_p7 }
  0x79   : > { %p4704_p11 = pneg %p4703_p3 }
  0x7b   : > { %p4709_p13 = pnand %p4707_p12, %p4704_p11 }
  0x7d   : > { %4712 = shalt.err (!%p4709_p13)
}
  0x7e   : > { %s4713_s0 = scalar_lea.vmem %s638_s27, 2048  ;;  %p4721_p6 = scmp.lt.s32.totalorder %s638_s27, %s638_s27 }
  0x7f   : > { %p4714_p0 = scmp.ne.s32.totalorder %s638_s27, %s4713_s0  ;;  %p4722_p8 = scmp.lt.s32.totalorder %s4713_s0, %s4713_s0 }
  0x81   : > { %p4716_p1 = pnand %p4714_p0, %p5088_p7  ;;  %p4723_p9 = por %p4722_p8, %p4721_p6 }
  0x83   : > { %p4717_p4 = pneg %p4716_p1 }
  0x85   : > { %p4724_p10 = pnand %p4723_p9, %p4717_p4 }
  0x87   : > { %4727 = shalt.err (!%p4724_p10)
}
  0x88   : > { %4400 = dma.hbm_to_vmem [thread:$0]  (!%p5074_p5), %s5985_s18, 2048, %s638_s27, [#allocation17], %s6012_s28, %s6012_s28, %s4932_s30  }
  0x89   : > { %s6013_s25 = sld [smem:[#allocation29_spill]] }
  0x8f   : > { %s4728_s4 = scalar_lea.hbm %s6013_s25, 16 }
  0x90   : > { %p4729_p2 = scmp.ne.s32.totalorder %s6013_s25, %s4728_s4  ;;  %p4735_p12 = scmp.lt.u32.totalorder %s4728_s4, %s6013_s25 }
  0x92   : > { %p4731_p3 = pnand %p4729_p2, %p5088_p7 }
  0x94   : > { %p4732_p11 = pneg %p4731_p3 }
  0x96   : > { %p4737_p13 = pnand %p4735_p12, %p4732_p11 }
  0x98   : > { %4740 = shalt.err (!%p4737_p13)
}
  0x99   : > { %s4741_s0 = scalar_lea.vmem %s514_s23, 16  ;;  %s4748_s30 = scalar_lea.vmem %s514_s23, 32 }
  0x9a   : > { %p4742_p0 = scmp.ne.s32.totalorder %s514_s23, %s4741_s0  ;;  %p4749_p6 = scmp.lt.s32.totalorder %s514_s23, %s514_s23 }
  0x9b   : > { %p4750_p8 = scmp.lt.s32.totalorder %s4748_s30, %s4741_s0 }
  0x9c   : > { %p4744_p1 = pnand %p4742_p0, %p5088_p7 }
  0x9d   : > { %p4751_p9 = por %p4750_p8, %p4749_p6 }
  0x9e   : > { %p4745_p4 = pneg %p4744_p1 }
  0xa0   : > { %p4752_p10 = pnand %p4751_p9, %p4745_p4 }
  0xa2   : > { %4755 = shalt.err (!%p4752_p10)
}
  0xa3   : > { %4373 = dma.hbm_to_vmem [thread:$0]  (!%p5074_p5), %s6013_s25, 16, %s514_s23, [#allocation3]  }
  0xa4   : > { %s4938_s7 = smov [#allocation6]   ;;  %s4939_s17 = smov [#allocation9]  }
  0xa5   : > { %s546_s16 = sshll.u32 %s4938_s7, 4  ;;  %s570_s21 = sshll.u32 %s4939_s17, 4  ;;  %s547_s16 = int_to_ptr.vmem [resolvable:$true] %s546_s16  ;;  %s571_s21 = int_to_ptr.vmem [resolvable:$true] %s570_s21 }
  0xa6   : > { %s6014_s8 = sld [smem:[#allocation32_spill]] }
  0xac   : > { %s4756_s3 = scalar_lea.hbm %s6014_s8, 16 }
  0xad   : > { %p4757_p2 = scmp.ne.s32.totalorder %s6014_s8, %s4756_s3  ;;  %p4763_p12 = scmp.lt.u32.totalorder %s4756_s3, %s6014_s8 }
  0xaf   : > { %p4759_p3 = pnand %p4757_p2, %p5088_p7 }
  0xb1   : > { %p4760_p11 = pneg %p4759_p3 }
  0xb3   : > { %p4765_p13 = pnand %p4763_p12, %p4760_p11 }
  0xb5   : > { %4768 = shalt.err (!%p4765_p13)
}
  0xb6   : > { %s4769_s23 = scalar_lea.vmem %s547_s16, 16  ;;  %s4776_s28 = scalar_lea.vmem %s547_s16, 32 }
  0xb7   : > { %p4770_p0 = scmp.ne.s32.totalorder %s547_s16, %s4769_s23  ;;  %p4777_p6 = scmp.lt.s32.totalorder %s547_s16, %s547_s16 }
  0xb8   : > { %p4778_p8 = scmp.lt.s32.totalorder %s4776_s28, %s4769_s23 }
  0xb9   : > { %p4772_p1 = pnand %p4770_p0, %p5088_p7 }
  0xba   : > { %p4779_p9 = por %p4778_p8, %p4777_p6 }
  0xbb   : > { %p4773_p4 = pneg %p4772_p1 }
  0xbd   : > { %p4780_p10 = pnand %p4779_p9, %p4773_p4 }
  0xbf   : > { %4783 = shalt.err (!%p4780_p10)
}
  0xc0   : > { %4379 = dma.hbm_to_vmem [thread:$0]  (!%p5074_p5), %s6014_s8, 16, %s547_s16, [#allocation5]  }
  0xc1   : > { %s4784_s20 = scalar_lea.hbm %s5978_s11, 8192 }
  0xc2   : > { %p4785_p2 = scmp.ne.s32.totalorder %s5978_s11, %s4784_s20  ;;  %p4791_p12 = scmp.lt.u32.totalorder %s4784_s20, %s5978_s11 }
  0xc4   : > { %p4787_p3 = pnand %p4785_p2, %p5088_p7 }
  0xc6   : > { %p4788_p11 = pneg %p4787_p3 }
  0xc8   : > { %p4793_p13 = pnand %p4791_p12, %p4788_p11 }
  0xca   : > { %4796 = shalt.err (!%p4793_p13)
}
  0xcb   : > { %s4797_s30 = scalar_lea.vmem %s571_s21, 8192  ;;  %p4805_p6 = scmp.lt.s32.totalorder %s571_s21, %s571_s21 }
  0xcc   : > { %p4798_p0 = scmp.ne.s32.totalorder %s571_s21, %s4797_s30  ;;  %p4806_p8 = scmp.lt.s32.totalorder %s4797_s30, %s4797_s30 }
  0xce   : > { %p4800_p1 = pnand %p4798_p0, %p5088_p7  ;;  %p4807_p9 = por %p4806_p8, %p4805_p6 }
  0xd0   : > { %p4801_p4 = pneg %p4800_p1 }
  0xd2   : > { %p4808_p10 = pnand %p4807_p9, %p4801_p4 }
  0xd4   : > { %4811 = shalt.err (!%p4808_p10)
}
  0xd5   : > { %s6015_s16 = smov 32   ;;  %s6016_s23 = smov 512  }
  0xd6   : > { %4385 = dma.hbm_to_vmem [thread:$0]  (!%p5074_p5), %s5978_s11, 8192, %s571_s21, [#allocation8], %s6016_s23, %s6016_s23, %s6015_s16  }
  0xd7   : > { %s4940_s7 = smov [#allocation12]   ;;  %s4941_s4 = smov [#allocation15]  }
  0xd8   : > { %s597_s17 = sshll.u32 %s4940_s7, 4  ;;  %s621_s20 = sshll.u32 %s4941_s4, 4  ;;  %s598_s17 = int_to_ptr.vmem [resolvable:$true] %s597_s17  ;;  %s622_s20 = int_to_ptr.vmem [resolvable:$true] %s621_s20 }
  0xd9   : > { %s4812_s1 = scalar_lea.hbm %s5980_s13, 64 }
  0xda   : > { %p4813_p2 = scmp.ne.s32.totalorder %s5980_s13, %s4812_s1  ;;  %p4819_p12 = scmp.lt.u32.totalorder %s4812_s1, %s5980_s13 }
  0xdc   : > { %p4815_p3 = pnand %p4813_p2, %p5088_p7 }
  0xde   : > { %p4816_p11 = pneg %p4815_p3 }
  0xe0   : > { %p4821_p13 = pnand %p4819_p12, %p4816_p11 }
  0xe2   : > { %4824 = shalt.err (!%p4821_p13)
}
  0xe3   : > { %s4825_s21 = scalar_lea.vmem %s598_s17, 64  ;;  %p4833_p6 = scmp.lt.s32.totalorder %s598_s17, %s598_s17 }
  0xe4   : > { %p4826_p0 = scmp.ne.s32.totalorder %s598_s17, %s4825_s21  ;;  %p4834_p8 = scmp.lt.s32.totalorder %s4825_s21, %s4825_s21 }
  0xe6   : > { %p4828_p1 = pnand %p4826_p0, %p5088_p7  ;;  %p4835_p9 = por %p4834_p8, %p4833_p6 }
  0xe8   : > { %p4829_p4 = pneg %p4828_p1 }
  0xea   : > { %p4836_p10 = pnand %p4835_p9, %p4829_p4 }
  0xec   : > { %4839 = shalt.err (!%p4836_p10)
}
  0xed   : > { %4391 = dma.hbm_to_vmem [thread:$0]  (!%p5074_p5), %s5980_s13, 64, %s598_s17, [#allocation11]  }
  0xee   : > { %s4840_s7 = scalar_lea.hbm %s5982_s15, 16 }
  0xef   : > { %p4841_p2 = scmp.ne.s32.totalorder %s5982_s15, %s4840_s7  ;;  %p4847_p12 = scmp.lt.u32.totalorder %s4840_s7, %s5982_s15 }
  0xf1   : > { %p4843_p3 = pnand %p4841_p2, %p5088_p7 }
  0xf3   : > { %p4844_p11 = pneg %p4843_p3 }
  0xf5   : > { %p4849_p13 = pnand %p4847_p12, %p4844_p11 }
  0xf7   : > { %4852 = shalt.err (!%p4849_p13)
}
  0xf8   : > { %s4853_s0 = scalar_lea.vmem %s622_s20, 16  ;;  %s4860_s17 = scalar_lea.vmem %s622_s20, 32 }
  0xf9   : > { %p4854_p0 = scmp.ne.s32.totalorder %s622_s20, %s4853_s0  ;;  %p4861_p6 = scmp.lt.s32.totalorder %s622_s20, %s622_s20 }
  0xfa   : > { %p4862_p8 = scmp.lt.s32.totalorder %s4860_s17, %s4853_s0 }
  0xfb   : > { %p4856_p1 = pnand %p4854_p0, %p5088_p7 }
  0xfc   : > { %p4863_p9 = por %p4862_p8, %p4861_p6 }
  0xfd   : > { %p4857_p4 = pneg %p4856_p1 }
  0xff   : > { %p4864_p10 = pnand %p4863_p9, %p4857_p4 }
 0x101   : > { %4867 = shalt.err (!%p4864_p10)
}
 0x102   : > { %4397 = dma.hbm_to_vmem [thread:$0]  (!%p5074_p5), %s5982_s15, 16, %s622_s20, [#allocation14]  }
 0x103   : > { %s4942_s21 = smov [#allocation18]   ;;  %s4868_s27 = scalar_lea.hbm %s5986_s19, 16 }
 0x104   : > { %s651_s16 = sshll.u32 %s4942_s21, 4  ;;  %p4869_p2 = scmp.ne.s32.totalorder %s5986_s19, %s4868_s27  ;;  %s652_s16 = int_to_ptr.vmem [resolvable:$true] %s651_s16 }
 0x105   : > { %p4875_p12 = scmp.lt.u32.totalorder %s4868_s27, %s5986_s19 }
 0x106   : > { %p4871_p3 = pnand %p4869_p2, %p5088_p7 }
 0x108   : > { %p4872_p11 = pneg %p4871_p3 }
 0x10a   : > { %p4877_p13 = pnand %p4875_p12, %p4872_p11 }
 0x10c   : > { %4880 = shalt.err (!%p4877_p13)
}
 0x10d   : > { %s4881_s20 = scalar_lea.vmem %s652_s16, 16  ;;  %s4888_s1 = scalar_lea.vmem %s652_s16, 32 }
 0x10e   : > { %p4882_p0 = scmp.ne.s32.totalorder %s652_s16, %s4881_s20  ;;  %p4889_p6 = scmp.lt.s32.totalorder %s652_s16, %s652_s16 }
 0x10f   : > { %p4890_p8 = scmp.lt.s32.totalorder %s4888_s1, %s4881_s20 }
 0x110   : > { %p4884_p1 = pnand %p4882_p0, %p5088_p7 }
 0x111   : > { %p4891_p9 = por %p4890_p8, %p4889_p6 }
 0x112   : > { %p4885_p4 = pneg %p4884_p1 }
 0x114   : > { %p4892_p10 = pnand %p4891_p9, %p4885_p4 }
 0x116   : > { %4895 = shalt.err (!%p4892_p10)
}
 0x117   : > { %4403 = dma.hbm_to_vmem [thread:$0]  (!%p5074_p5), %s5986_s19, 16, %s652_s16, [#allocation17]  }
 0x118   : > { %p6017_p2 = scmp.ne.s32.totalorder %s6008_s2, 0 }
 0x119   : > { %p6018_p3 = scmp.eq.s32.totalorder (!%p6017_p2), %s5057_s24, 0 }
 0x11a   : > { %678 = sbr.rel (%p6017_p2) target bundleno = 4278 (0x10b6), region = 100 }
 0x121   : > { %4901 = dma.done.wait (%p6018_p3), [#allocation3], 16   ;;  %p6019_p7 = pmov %p6018_p3 }
 0x122   : > { %p6020_p11 = pmov %p6018_p3 }
 0x123   : > { %4903 = vsyncadd (%p6019_p7), [#allocation3], 4294967280 }
 0x124   : > { %4905 = dma.done.wait (%p6020_p11), [#allocation5], 2064   ;;  %p6021_p12 = pmov %p6018_p3 }
 0x125   : > { %p6022_p13 = pmov %p6018_p3 }
 0x126   : > { %4907 = vsyncadd (%p6021_p12), [#allocation5], 4294965232 }
 0x127   : > { %4909 = dma.done.wait (%p6022_p13), [#allocation8], 8208   ;;  %p6023_p5 = pmov %p6018_p3 }
 0x128   : > { %p6024_p0 = pmov %p6018_p3 }
 0x129   : > { %4911 = vsyncadd (%p6023_p5), [#allocation8], 4294959088 }
 0x12a   : > { %4913 = dma.done.wait (%p6024_p0), [#allocation11], 8256   ;;  %p6025_p1 = pmov %p6024_p0 }
 0x12b   : > { %p6026_p4 = pmov %p6024_p0 }
 0x12c   : > { %4915 = vsyncadd (%p6025_p1), [#allocation11], 4294959040 }
 0x12d   : > { %4917 = dma.done.wait (%p6026_p4), [#allocation14], 2064   ;;  %p6027_p6 = pmov %p6024_p0 }
 0x12e   : > { %p6028_p8 = pmov %p6024_p0 }
 0x12f   : > { %4919 = vsyncadd (%p6027_p6), [#allocation14], 4294965232 }
 0x130   : > { %4921 = dma.done.wait (%p6028_p8), [#allocation17], 2064   ;;  %p6029_p9 = pmov %p6024_p0 }
 0x131   : > { %v4943_v0 = vmov 0.0|0.0   ;;  %vm4944_vm0 = vmmov 0   ;;  %v4945_v1 = vmov 0.0   ;;  %s6030_s22 = sld [smem:[#allocation28_spill]]  ;;  %p778_p10 = scmp.lt.s32.totalorder %s5057_s24, 1  ;;  %v933_v31 = vld [vmem:[#allocation4] sm:$0xff]  ;;  %v886_v46 = vlaneseq }
 0x132   : > { %4923 = vsyncadd (%p6029_p9), [#allocation17], 4294965232  ;;  %3630 = vmatprep.subr.bf16.mxu0 %v4943_v0  ;;  %3487 = vmatprep.mubr.msk.f32.mxu0 %vm4944_vm0, %v4945_v1  ;;  %s6031_s26 = sld [smem:[#allocation26_spill]]  ;;  %v3334_v27 = vld [vmem:[#allocation2] ss:$0 sm:$0xff]  ;;  %v934_v32 = vld [vmem:[#allocation4 + $0x8] sm:$0xff] }
 0x133   : > { %3654 = vmatprep.subr.bf16.mxu1 %v4943_v0  ;;  %3522 = vmatprep.mubr.msk.f32.mxu1 %vm4944_vm0, %v4945_v1  ;;  %s6039_s24 = smov (!%p778_p10, %s5057_s24), 1  ;;  %v916_v33 = vld [vmem:[%s5973_s6] sm:$0xff]  ;;  %v3655_v34 = vpack.c.bf16 %v934_v32, %v933_v31  ;;  %v917_v35 = vld [vmem:[%s5973_s6 + $0x8] sm:$0xff]  ;;  %v935_v36 = vld [vmem:[#allocation4 + $0x10] sm:$0xff]  ;;  %v5427_v47 = vand.u32 127, %v886_v46  ;;  %s6033_s23 = sld [smem:[#allocation30_spill]] }
 0x134   : > { %s5399_s0 = sshll.u32 %s6039_s24, 3  ;;  %v936_v37 = vld [vmem:[#allocation4 + $0x18] sm:$0xff]  ;;  %v3679_v38 = vpack.c.bf16 %v917_v35, %v916_v33  ;;  %v918_v39 = vld [vmem:[%s5973_s6 + $0x10] sm:$0xff]  ;;  %v937_v43 = vld [vmem:[#allocation4 + $0x20] sm:$0xff]  ;;  %s6032_s24 = sld [smem:[#allocation27_spill]]  ;;  %vm2901_vm3 = vcmask 1040384  }
 0x135   : > { %v919_v40 = vld [vmem:[%s5973_s6 + $0x18] sm:$0xff]  ;;  %3656 = vmatpush3.bf16.msra.mxu1 %v3655_v34  ;;  %v3658_v41 = vpack.c.bf16 %v936_v37, %v935_v36  ;;  %v938_v44 = vld [vmem:[#allocation4 + $0x28] sm:$0xff]  ;;  %vm892_vm1 = vcmp.lt.s32.totalorder %v5427_v47, 32  ;;  %v920_v53 = vld [vmem:[%s5973_s6 + $0x20] sm:$0xff]  ;;  %vm1103_vm2 = vcmp.lt.s32.totalorder %v5427_v47, 64  ;;  %vm2903_vm4 = vcmask 1041408  }
 0x136   : > { %3657 = vmatprep.subr.bf16.mxu1 %v4943_v0  ;;  %v3682_v42 = vpack.c.bf16 %v919_v40, %v918_v39  ;;  %v3661_v45 = vpack.c.bf16 %v938_v44, %v937_v43  ;;  %v921_v54 = vld [vmem:[%s5973_s6 + $0x28] sm:$0xff]  ;;  %v939_v56 = vld [vmem:[#allocation4 + $0x30] sm:$0xff]  ;;  %v940_v57 = vld [vmem:[#allocation4 + $0x38] sm:$0xff]  ;;  %vm2905_vm5 = vcmask 1042432   ;;  %vm2907_vm6 = vcmask 1043456   ;;  %s6034_s20 = sld [smem:[#allocation33_spill]] }
 0x137   : > { %v791_v2 = vld [vmem:[%s6030_s22] sm:$0xff]  ;;  %v792_v3 = vld [vmem:[%s6030_s22 + $0x8] sm:$0xff]  ;;  %v793_v4 = vld [vmem:[%s6030_s22 + $0x10] sm:$0xff]  ;;  %v3685_v55 = vpack.c.bf16 %v921_v54, %v920_v53  ;;  %v3664_v58 = vpack.c.bf16 %v940_v57, %v939_v56  ;;  %vm2909_vm7 = vcmask 1044480   ;;  %vm2911_vm8 = vcmask 1045504   ;;  %s6035_s2 = sld [smem:[#allocation34_spill]] }
 0x138   : > { %v3631_v5 = vpack.c.bf16 %v792_v3, %v791_v2  ;;  %v794_v6 = vld [vmem:[%s6030_s22 + $0x18] sm:$0xff]  ;;  %v795_v8 = vld [vmem:[%s6030_s22 + $0x20] sm:$0xff]  ;;  %v796_v9 = vld [vmem:[%s6030_s22 + $0x28] sm:$0xff]  ;;  %s781_s30 = scalar_lea.vmem %s6031_s26, %s5399_s0  ;;  %vm2913_vm9 = vcmask 1046528  }
 0x139   : > { %v3634_v7 = vpack.c.bf16 %v794_v6, %v793_v4  ;;  %v3637_v10 = vpack.c.bf16 %v796_v9, %v795_v8  ;;  %v797_v11 = vld [vmem:[%s6030_s22 + $0x30] sm:$0xff]  ;;  %v798_v12 = vld [vmem:[%s6030_s22 + $0x38] sm:$0xff]  ;;  %v799_v14 = vld [vmem:[%s6030_s22 + $0x40] sm:$0xff]  ;;  %3659 = vmatpush3.bf16.msra.mxu1 %v3658_v41 }
 0x13a   : > { %3632 = vmatpush3.bf16.msra.mxu0 %v3631_v5  ;;  %v3640_v13 = vpack.c.bf16 %v798_v12, %v797_v11  ;;  %v800_v15 = vld [vmem:[%s6030_s22 + $0x48] sm:$0xff]  ;;  %v801_v17 = vld [vmem:[%s6030_s22 + $0x50] sm:$0xff]  ;;  %v802_v18 = vld [vmem:[%s6030_s22 + $0x58] sm:$0xff]  ;;  %3660 = vmatprep.subr.bf16.mxu1 %v4943_v0  ;;  %s785_s28 = scalar_lea.vmem %s6032_s24, %s5399_s0  ;;  %s6036_s24 = sld [smem:[#allocation35_spill]] }
 0x13b   : > { %3633 = vmatprep.subr.bf16.mxu0 %v4943_v0  ;;  %v3643_v16 = vpack.c.bf16 %v800_v15, %v799_v14  ;;  %v3646_v19 = vpack.c.bf16 %v802_v18, %v801_v17  ;;  %v803_v20 = vld [vmem:[%s6030_s22 + $0x60] sm:$0xff]  ;;  %v804_v21 = vld [vmem:[%s6030_s22 + $0x68] sm:$0xff]  ;;  %v805_v23 = vld [vmem:[%s6030_s22 + $0x70] sm:$0xff] }
 0x13c   : > { %v3649_v22 = vpack.c.bf16 %v804_v21, %v803_v20  ;;  %v806_v24 = vld [vmem:[%s6030_s22 + $0x78] sm:$0xff]  ;;  %v790_v26 = vld [vmem:[%s781_s30] sm:$0xff]  ;;  %v922_v59 = vld [vmem:[%s5973_s6 + $0x30] sm:$0xff] }
 0x13d   : > { %v3652_v25 = vpack.c.bf16 %v806_v24, %v805_v23  ;;  %3662 = vmatpush3.bf16.msra.mxu1 %v3661_v45  ;;  %v923_v60 = vld [vmem:[%s5973_s6 + $0x38] sm:$0xff]  ;;  %v941_v62 = vld [vmem:[#allocation4 + $0x40] sm:$0xff]  ;;  %v942_v63 = vld [vmem:[#allocation4 + $0x48] sm:$0xff] }
 0x13e   : > { %3635 = vmatpush3.bf16.msra.mxu0 %v3634_v7  ;;  %3663 = vmatprep.subr.bf16.mxu1 %v4943_v0  ;;  %v3688_v61 = vpack.c.bf16 %v923_v60, %v922_v59  ;;  %v924_v2 = vld [vmem:[%s5973_s6 + $0x40] sm:$0xff]  ;;  %v3667_v3 = vpack.c.bf16 %v942_v63, %v941_v62  ;;  %v925_v4 = vld [vmem:[%s5973_s6 + $0x48] sm:$0xff]  ;;  %v943_v5 = vld [vmem:[#allocation4 + $0x50] sm:$0xff] }
 0x13f   : > { %3636 = vmatprep.subr.bf16.mxu0 %v4943_v0  ;;  %v944_v6 = vld [vmem:[#allocation4 + $0x58] sm:$0xff]  ;;  %v3691_v7 = vpack.c.bf16 %v925_v4, %v924_v2  ;;  %v926_v8 = vld [vmem:[%s5973_s6 + $0x50] sm:$0xff]  ;;  %v945_v12 = vld [vmem:[#allocation4 + $0x60] sm:$0xff] }
 0x140   : > { %v927_v9 = vld [vmem:[%s5973_s6 + $0x58] sm:$0xff]  ;;  %v928_v14 = vld [vmem:[%s5973_s6 + $0x60] sm:$0xff]  ;;  %v929_v15 = vld [vmem:[%s5973_s6 + $0x68] sm:$0xff] }
 0x141   : > { %3665 = vmatpush3.bf16.msra.mxu1 %v3664_v58  ;;  %v3694_v11 = vpack.c.bf16 %v927_v9, %v926_v8  ;;  %v3697_v17 = vpack.c.bf16 %v929_v15, %v928_v14  ;;  %v947_v18 = vld [vmem:[#allocation4 + $0x70] sm:$0xff]  ;;  %v932_v24 = vld [vmem:[%s785_s28] sm:$0xff]  ;;  %s789_s28 = scalar_lea.vmem %s6036_s24, %s5399_s0 }
 0x142   : > { %3638 = vmatpush3.bf16.msra.mxu0 %v3637_v10  ;;  %3666 = vmatprep.subr.bf16.mxu1 %v4943_v0  ;;  %v3670_v10 = vpack.c.bf16 %v944_v6, %v943_v5  ;;  %v930_v20 = vld [vmem:[%s5973_s6 + $0x70] sm:$0xff]  ;;  %v931_v21 = vld [vmem:[%s5973_s6 + $0x78] sm:$0xff]  ;;  %v3336_v31 = vld [vmem:[%s5972_s5] ss:$0 sm:$0xff] }
 0x143   : > { %3639 = vmatprep.subr.bf16.mxu0 %v4943_v0  ;;  %v3700_v23 = vpack.c.bf16 %v931_v21, %v930_v20  ;;  %v1131_v43 = vld [vmem:[#allocation9 + $0x28] sm:$0xff]  ;;  %v1129_v44 = vld [vmem:[#allocation9 + $0x18] sm:$0xff]  ;;  %v1128_v53 = vld [vmem:[#allocation9 + $0x10] sm:$0xff] }
 0x144   : > { %v1132_v54 = vld [vmem:[#allocation9 + $0x30] sm:$0xff]  ;;  %v1139_v57 = vld [vmem:[#allocation9 + $0x68] sm:$0xff]  ;;  %v1137_v58 = vld [vmem:[#allocation9 + $0x58] sm:$0xff] }
 0x145   : > { %3668 = vmatpush3.bf16.msra.mxu1 %v3667_v3  ;;  %v3736_v56 = vpack.c.bf16 %v1132_v54, %v1128_v53  ;;  %v1141_v59 = vld [vmem:[#allocation9 + $0x78] sm:$0xff]  ;;  %v1134_v62 = vld [vmem:[#allocation9 + $0x40] sm:$0xff]  ;;  %v1136_v2 = vld [vmem:[#allocation9 + $0x50] sm:$0xff] }
 0x146   : > { %3641 = vmatpush3.bf16.msra.mxu0 %v3640_v13  ;;  %3669 = vmatprep.subr.bf16.mxu1 %v4943_v0  ;;  %v946_v13 = vld [vmem:[#allocation4 + $0x68] sm:$0xff]  ;;  %v1140_v4 = vld [vmem:[#allocation9 + $0x70] sm:$0xff]  ;;  %v1145_v9 = vld [vmem:[#allocation9 + $0x98] sm:$0xff] }
 0x147   : > { %3642 = vmatprep.subr.bf16.mxu0 %v4943_v0  ;;  %v1138_v63 = vld [vmem:[#allocation9 + $0x60] sm:$0xff]  ;;  %v1143_v5 = vld [vmem:[#allocation9 + $0x88] sm:$0xff]  ;;  %v1144_v14 = vld [vmem:[#allocation9 + $0x90] sm:$0xff] }
 0x148   : > { %v3708_v3 = vpack.c.bf16 %v1138_v63, %v1134_v62  ;;  %v1147_v6 = vld [vmem:[#allocation9 + $0xa8] sm:$0xff]  ;;  %v1148_v15 = vld [vmem:[#allocation9 + $0xb0] sm:$0xff]  ;;  %v1173_v53 = vld [vmem:[#allocation9 + $0x178] sm:$0xff] }
 0x149   : > { %3671 = vmatpush3.bf16.msra.mxu1 %v3670_v10  ;;  %v3710_v8 = vpack.c.bf16 %v1147_v6, %v1143_v5  ;;  %v1149_v10 = vld [vmem:[#allocation9 + $0xb8] sm:$0xff]  ;;  %v1166_v54 = vld [vmem:[#allocation9 + $0x140] sm:$0xff]  ;;  %v1179_v62 = vld [vmem:[#allocation9 + $0x1a8] sm:$0xff] }
 0x14a   : > { %3644 = vmatpush3.bf16.msra.mxu0 %v3643_v16  ;;  %v3673_v16 = vpack.c.bf16 %v946_v13, %v945_v12  ;;  %3672 = vmatprep.subr.bf16.mxu1 %v4943_v0  ;;  %v3742_v12 = vpack.c.bf16 %v1149_v10, %v1145_v9  ;;  %v1146_v13 = vld [vmem:[#allocation9 + $0xa0] sm:$0xff]  ;;  %v1177_v63 = vld [vmem:[#allocation9 + $0x198] sm:$0xff]  ;;  %v1180_v9 = vld [vmem:[#allocation9 + $0x1b0] sm:$0xff] }
 0x14b   : > { %3645 = vmatprep.subr.bf16.mxu0 %v4943_v0  ;;  %v1174_v5 = vld [vmem:[#allocation9 + $0x180] sm:$0xff]  ;;  %v1183_v10 = vld [vmem:[#allocation9 + $0x1c8] sm:$0xff]  ;;  %v3047_v47 = vld [vmem:[#allocation16 + $0x50] sm:$0xff] }
 0x14c   : > { %v1178_v6 = vld [vmem:[#allocation9 + $0x1a0] sm:$0xff] }
 0x14d   : > { %3674 = vmatpush3.bf16.msra.mxu1 %v3673_v16 }
 0x14e   : > { %3647 = vmatpush3.bf16.msra.mxu0 %v3646_v19  ;;  %v948_v19 = vld [vmem:[#allocation4 + $0x78] sm:$0xff]  ;;  %3675 = vmatprep.subr.bf16.mxu1 %v4943_v0 }
 0x14f   : > { %3648 = vmatprep.subr.bf16.mxu0 %v4943_v0 }
 0x152   : > { %3650 = vmatpush3.bf16.msra.mxu0 %v3649_v22  ;;  %v3676_v22 = vpack.c.bf16 %v948_v19, %v947_v18 }
 0x153   : > { %3651 = vmatprep.subr.bf16.mxu0 %v4943_v0 }
 0x154   : > { %3677 = vmatpush3.bf16.msra.mxu1 %v3676_v22 }
 0x156   : > { %3653 = vmatpush3.bf16.msra.mxu0 %v3652_v25 }
 0x157   : > { %3678 = vmatprep.subr.bf16.mxu0 %v4943_v0  ;;  %3523 = vmatmul.mubr.f32.vlgmr.msra.gmra.mrb[0].mxu1 %v932_v24  ;;  %v1155_v24 = vld [vmem:[#allocation9 + $0xe8] sm:$0xff] }
 0x158   : > { %1276 = vmatprep.mubr.f32.mxu1 %v4945_v1 }
 0x159   : > { %3488 = vmatmul.mubr.f32.vlgmr.msra.gmra.mrb[0].mxu0 %v790_v26 }
 0x15a   : > { %3557 = vmatprep.mubr.msk.f32.mxu0 %vm4944_vm0, %v4945_v1  ;;  %3680 = vmatpush3.bf16.msra.mxu0 %v3679_v38  ;;  %v3337_v38 = vld [vmem:[#allocation6] ss:$0 sm:$0xff] }
 0x15b   : > { %3681 = vmatprep.subr.bf16.mxu0 %v4943_v0 }
 0x15e   : > { %3683 = vmatpush3.bf16.msra.mxu0 %v3682_v42  ;;  %v1127_v42 = vld [vmem:[#allocation9 + $0x8] sm:$0xff] }
 0x15f   : > { %3684 = vmatprep.subr.bf16.mxu0 %v4943_v0  ;;  %v3702_v45 = vpack.c.bf16 %v1131_v43, %v1127_v42 }
 0x161   : > { %3703 = vmatprep.subr.bf16.mxu1 %v3702_v45  ;;  %v1164_v45 = vld [vmem:[#allocation9 + $0x130] sm:$0xff] }
 0x162   : > { %3686 = vmatpush3.bf16.msra.mxu0 %v3685_v55  ;;  %v1135_v55 = vld [vmem:[#allocation9 + $0x48] sm:$0xff] }
 0x163   : > { %3687 = vmatprep.subr.bf16.mxu0 %v4943_v0  ;;  %v3706_v60 = vpack.c.bf16 %v1139_v57, %v1135_v55  ;;  %v1170_v55 = vld [vmem:[#allocation9 + $0x160] sm:$0xff] }
 0x164   : > { %v3724_v57 = vpack.c.bf16 %v1170_v55, %v1166_v54  ;;  %v1364_v55 = vld [vmem:[#allocation10 + $0x50] sm:$0xff] }
 0x166   : > { %3689 = vmatpush3.bf16.msra.mxu0 %v3688_v61  ;;  %v3738_v61 = vpack.c.bf16 %v1141_v59, %v1137_v58  ;;  %v1168_v58 = vld [vmem:[#allocation9 + $0x150] sm:$0xff] }
 0x167   : > { %3690 = vmatprep.subr.bf16.mxu0 %v4943_v0  ;;  %v1172_v59 = vld [vmem:[#allocation9 + $0x170] sm:$0xff] }
 0x16a   : > { %3692 = vmatpush3.bf16.msra.mxu0 %v3691_v7  ;;  %v3740_v7 = vpack.c.bf16 %v1140_v4, %v1136_v2  ;;  %v1181_v2 = vld [vmem:[#allocation9 + $0x1b8] sm:$0xff] }
 0x16b   : > { %3693 = vmatprep.subr.bf16.mxu0 %v4943_v0  ;;  %v3758_v4 = vpack.c.bf16 %v1181_v2, %v1177_v63  ;;  %v1374_v63 = vld [vmem:[#allocation10 + $0xa0] sm:$0xff] }
 0x16e   : > { %3695 = vmatpush3.bf16.msra.mxu0 %v3694_v11  ;;  %v1142_v11 = vld [vmem:[#allocation9 + $0x80] sm:$0xff] }
 0x16f   : > { %3696 = vmatprep.subr.bf16.mxu0 %v4943_v0  ;;  %v3712_v16 = vpack.c.bf16 %v1146_v13, %v1142_v11  ;;  %v1187_v11 = vld [vmem:[#allocation9 + $0x1e8] sm:$0xff] }
 0x170   : > { %v3730_v13 = vpack.c.bf16 %v1187_v11, %v1183_v10 }
 0x172   : > { %3698 = vmatpush3.bf16.msra.mxu0 %v3697_v17  ;;  %v3744_v17 = vpack.c.bf16 %v1148_v15, %v1144_v14  ;;  %v1185_v14 = vld [vmem:[#allocation9 + $0x1d8] sm:$0xff] }
 0x173   : > { %3699 = vmatprep.subr.bf16.mxu0 %v4943_v0  ;;  %v1189_v15 = vld [vmem:[#allocation9 + $0x1f8] sm:$0xff] }
 0x176   : > { %3701 = vmatpush3.bf16.msra.mxu0 %v3700_v23  ;;  %v1151_v23 = vld [vmem:[#allocation9 + $0xc8] sm:$0xff] }
 0x22a   : > { %v1015_v35 = vpop.f32.mrb[0].mxu1 }
 0x22b   : > { %v3524_v36 = vpop.f32.mrb[1].mxu1 }
 0x22c   : > { %v880_v28 = vpop.f32.mrb[0].mxu0  ;;  %v1163_v36 = vld [vmem:[#allocation9 + $0x128] sm:$0xff] }
 0x22d   : > { %v881_v29 = vadd.f32 %v3334_v27, %v880_v28  ;;  %v3489_v30 = vpop.f32.mrb[1].mxu0 }
 0x22f   : > { %888 = vadd.xlane.f32.xlu0 %v881_v29 }
 0x2bc   : > { %v889_v48 = vpop.xlane.xlu0 %888 }
 0x2bd   : > { %v890_v49 = vmul.f32 0.03125, %v889_v48  ;;  %v1133_v48 = vld [vmem:[#allocation9 + $0x38] sm:$0xff] }
 0x2bf   : > { %v5430_v50 = vsub.f32 %v881_v29, %v890_v49  ;;  %v3335_v29 = vld [vmem:[%s6033_s23] ss:$0 sm:$0xff]  ;;  %v1126_v49 = vld [vmem:[#allocation9] sm:$0xff] }
 0x2c1   : > { %v893_v51 = vsel %vm892_vm1, %v5430_v50, 0.0 }
 0x2c2   : > { %v894_v52 = vmul.f32 %v893_v51, %v893_v51  ;;  %v3734_v51 = vpack.c.bf16 %v1133_v48, %v1129_v44  ;;  %v1160_v44 = vld [vmem:[#allocation9 + $0x110] sm:$0xff] }
 0x2c3   : > { %v3752_v48 = vpack.c.bf16 %v1164_v45, %v1160_v44  ;;  %v1369_v44 = vld [vmem:[#allocation10 + $0x78] sm:$0xff] }
 0x2c4   : > { %895 = vadd.xlane.f32.xlu0 %v894_v52  ;;  %3735 = vmatprep.subr.bf16.mxu0 %v3734_v51  ;;  %v1169_v51 = vld [vmem:[#allocation9 + $0x158] sm:$0xff] }
 0x351   : > { %v896_v25 = vpop.xlane.xlu0 %895 }
 0x352   : > { %v897_v26 = vmul.f32 0.03125, %v896_v25  ;;  %v1153_v25 = vld [vmem:[#allocation9 + $0xd8] sm:$0xff] }
 0x354   : > { %v898_v27 = vadd.f32 1e-05, %v897_v26  ;;  %v3714_v26 = vpack.c.bf16 %v1155_v24, %v1151_v23  ;;  %v1359_v23 = vld [vmem:[#allocation10 + $0x28] sm:$0xff]  ;;  %v1357_v24 = vld [vmem:[#allocation10 + $0x18] sm:$0xff] }
 0x356   : > { %4452 = vrsqrt.f32 %v898_v27  ;;  %v1157_v27 = vld [vmem:[#allocation9 + $0xf8] sm:$0xff] }
 0x360   : > { %v4453_v28 = vpop.eup %4452 }
 0x361   : > { %v900_v30 = vmul.f32 %v4453_v28, %v5430_v50  ;;  %v1130_v50 = vld [vmem:[#allocation9 + $0x20] sm:$0xff] }
 0x362   : > { %v3704_v52 = vpack.c.bf16 %v1130_v50, %v1126_v49  ;;  %v1150_v28 = vld [vmem:[#allocation9 + $0xc0] sm:$0xff]  ;;  %v1167_v49 = vld [vmem:[#allocation9 + $0x148] sm:$0xff] }
 0x363   : > { %v907_v32 = vmul.f32 %v3335_v29, %v900_v30  ;;  %v1154_v29 = vld [vmem:[#allocation9 + $0xe0] sm:$0xff]  ;;  %v3746_v30 = vpack.c.bf16 %v1157_v27, %v1153_v25  ;;  %v1171_v50 = vld [vmem:[#allocation9 + $0x168] sm:$0xff] }
 0x364   : > { %3705 = vmatpush1.bf16.msra.mxu1 %v3704_v52  ;;  %v3722_v52 = vpack.c.bf16 %v1171_v50, %v1167_v49  ;;  %v1362_v50 = vld [vmem:[#allocation10 + $0x40] sm:$0xff] }
 0x365   : > { %v914_v33 = vadd.f32 %v3336_v31, %v907_v32  ;;  %3707 = vmatprep.subr.bf16.mxu1 %v3706_v60  ;;  %v3716_v31 = vpack.c.bf16 %v1154_v29, %v1150_v28  ;;  %v1152_v32 = vld [vmem:[#allocation9 + $0xd0] sm:$0xff]  ;;  %v1175_v60 = vld [vmem:[#allocation9 + $0x188] sm:$0xff] }
 0x367   : > { %v915_v34 = vmax.f32 %v914_v33, 0.0  ;;  %v1156_v33 = vld [vmem:[#allocation9 + $0xf0] sm:$0xff] }
 0x368   : > { %3709 = vmatpush1.bf16.msra.mxu1 %v3708_v3  ;;  %v3726_v3 = vpack.c.bf16 %v1179_v62, %v1175_v60  ;;  %v1370_v62 = vld [vmem:[#allocation10 + $0x80] sm:$0xff] }
 0x369   : > { %3558 = vmatmul.mubr.f32.vlgmr.msra.gmra.mrb[2].mxu0 %v915_v34  ;;  %3711 = vmatprep.subr.bf16.mxu1 %v3710_v8  ;;  %v3748_v34 = vpack.c.bf16 %v1156_v33, %v1152_v32  ;;  %v3728_v8 = vpack.c.bf16 %v1178_v6, %v1174_v5  ;;  %v3338_v33 = vld [vmem:[#allocation7] ss:$0 sm:$0xff]  ;;  %v1376_v5 = vld [vmem:[#allocation10 + $0xb0] sm:$0xff]  ;;  %v1379_v6 = vld [vmem:[#allocation10 + $0xc8] sm:$0xff]  ;;  %v5531_v10 = vpack.c.bf16 %v1374_v63, %v1370_v62 }
 0x36a   : > { %1347 = vmatprep.mubr.f32.mxu0 %v4945_v1  ;;  %3737 = vmatpush1.bf16.msra.mxu0 %v3736_v56  ;;  %v3754_v56 = vpack.c.bf16 %v1173_v53, %v1169_v51  ;;  %v1366_v51 = vld [vmem:[#allocation10 + $0x60] sm:$0xff]  ;;  %v1404_v62 = vld [vmem:[#allocation10 + $0x190] sm:$0xff] }
 0x36b   : > { %3739 = vmatprep.subr.bf16.mxu0 %v3738_v61  ;;  %v3756_v61 = vpack.c.bf16 %v1172_v59, %v1168_v58  ;;  %v1373_v58 = vld [vmem:[#allocation10 + $0x98] sm:$0xff]  ;;  %v5517_v60 = vpack.c.bf16 %v1366_v51, %v1362_v50  ;;  %v1407_v50 = vld [vmem:[#allocation10 + $0x1a8] sm:$0xff]  ;;  %v1408_v63 = vld [vmem:[#allocation10 + $0x1b0] sm:$0xff] }
 0x36c   : > { %3713 = vmatpush1.bf16.msra.mxu1 %v3712_v16  ;;  %v1182_v16 = vld [vmem:[#allocation9 + $0x1c0] sm:$0xff]  ;;  %v1377_v59 = vld [vmem:[#allocation10 + $0xb8] sm:$0xff] }
 0x36d   : > { %3715 = vmatprep.subr.bf16.mxu1 %v3714_v26  ;;  %v1361_v26 = vld [vmem:[#allocation10 + $0x38] sm:$0xff] }
 0x36e   : > { %3741 = vmatpush1.bf16.msra.mxu0 %v3740_v7  ;;  %v1176_v7 = vld [vmem:[#allocation9 + $0x190] sm:$0xff]  ;;  %v5499_v29 = vpack.c.bf16 %v1361_v26, %v1357_v24  ;;  %v1390_v26 = vld [vmem:[#allocation10 + $0x120] sm:$0xff]  ;;  %v1405_v51 = vld [vmem:[#allocation10 + $0x198] sm:$0xff] }
 0x36f   : > { %3743 = vmatprep.subr.bf16.mxu0 %v3742_v12  ;;  %v3760_v12 = vpack.c.bf16 %v1180_v9, %v1176_v7  ;;  %v1383_v7 = vld [vmem:[#allocation10 + $0xe8] sm:$0xff]  ;;  %v1385_v9 = vld [vmem:[#allocation10 + $0xf8] sm:$0xff] }
 0x370   : > { %3717 = vmatpush1.bf16.msra.mxu1 %v3716_v31 }
 0x372   : > { %3745 = vmatpush1.bf16.msra.mxu0 %v3744_v17  ;;  %v3762_v17 = vpack.c.bf16 %v1189_v15, %v1185_v14  ;;  %v5537_v14 = vpack.c.bf16 %v1383_v7, %v1379_v6  ;;  %v1413_v6 = vld [vmem:[#allocation10 + $0x1d8] sm:$0xff] }
 0x373   : > { %3747 = vmatprep.subr.bf16.mxu0 %v3746_v30  ;;  %v1417_v7 = vld [vmem:[#allocation10 + $0x1f8] sm:$0xff] }
 0x376   : > { %3749 = vmatpush1.bf16.msra.mxu0 %v3748_v34 }
 0x43c   : > { %v1085_v37 = vpop.f32.mrb[2].mxu0 }
 0x43d   : > { %v1086_v39 = vadd.f32 %v1085_v37, %v1015_v35  ;;  %v3559_v40 = vpop.f32.mrb[3].mxu0  ;;  %v1159_v35 = vld [vmem:[#allocation9 + $0x108] sm:$0xff]  ;;  %v1161_v37 = vld [vmem:[#allocation9 + $0x118] sm:$0xff] }
 0x43e   : > { %v1158_v40 = vld [vmem:[#allocation9 + $0x100] sm:$0xff] }
 0x43f   : > { %v1096_v41 = vadd.f32 %v3337_v38, %v1086_v39  ;;  %v3718_v38 = vpack.c.bf16 %v1163_v36, %v1159_v35  ;;  %v1165_v39 = vld [vmem:[#allocation9 + $0x138] sm:$0xff]  ;;  %v1354_v36 = vld [vmem:[#allocation10] sm:$0xff] }
 0x440   : > { %v3750_v42 = vpack.c.bf16 %v1165_v39, %v1161_v37  ;;  %v3339_v35 = vld [vmem:[%s5977_s10] ss:$0 sm:$0xff]  ;;  %v1358_v37 = vld [vmem:[#allocation10 + $0x20] sm:$0xff]  ;;  %v1356_v39 = vld [vmem:[#allocation10 + $0x10] sm:$0xff] }
 0x441   : > { %1099 = vadd.xlane.f32.xlu1 %v1096_v41  ;;  %3719 = vmatprep.subr.bf16.mxu1 %v3718_v38 }
 0x442   : > { %3751 = vmatprep.subr.bf16.mxu0 %v3750_v42  ;;  %v1367_v42 = vld [vmem:[#allocation10 + $0x68] sm:$0xff] }
 0x443   : > { %3753 = vmatpush1.bf16.msra.mxu0 %v3752_v48  ;;  %v5507_v48 = vpack.c.bf16 %v1358_v37, %v1354_v36  ;;  %v1401_v36 = vld [vmem:[#allocation10 + $0x178] sm:$0xff] }
 0x444   : > { %3755 = vmatprep.subr.bf16.mxu0 %v3754_v56  ;;  %v1371_v56 = vld [vmem:[#allocation10 + $0x88] sm:$0xff] }
 0x447   : > { %3757 = vmatpush1.bf16.msra.mxu0 %v3756_v61 }
 0x448   : > { %3759 = vmatprep.subr.bf16.mxu0 %v3758_v4  ;;  %v1372_v4 = vld [vmem:[#allocation10 + $0x90] sm:$0xff] }
 0x449   : > { %v5533_v11 = vpack.c.bf16 %v1376_v5, %v1372_v4  ;;  %v1411_v4 = vld [vmem:[#allocation10 + $0x1c8] sm:$0xff] }
 0x44a   : > { %v1415_v5 = vld [vmem:[#allocation10 + $0x1e8] sm:$0xff] }
 0x44b   : > { %3761 = vmatpush1.bf16.msra.mxu0 %v3760_v12  ;;  %v1378_v12 = vld [vmem:[#allocation10 + $0xc0] sm:$0xff] }
 0x44c   : > { %3763 = vmatprep.subr.bf16.mxu0 %v3762_v17  ;;  %v1384_v17 = vld [vmem:[#allocation10 + $0xf0] sm:$0xff] }
 0x4ce   : > { %v1100_v18 = vpop.xlane.xlu1 %1099 }
 0x4cf   : > { %v1101_v19 = vmul.f32 0.015625, %v1100_v18  ;;  %v1186_v18 = vld [vmem:[#allocation9 + $0x1e0] sm:$0xff] }
 0x4d0   : > { %v3732_v25 = vpack.c.bf16 %v1186_v18, %v1182_v16  ;;  %v1380_v16 = vld [vmem:[#allocation10 + $0xd0] sm:$0xff]  ;;  %v1387_v18 = vld [vmem:[#allocation10 + $0x108] sm:$0xff] }
 0x4d1   : > { %v5494_v20 = vsub.f32 %v1096_v41, %v1101_v19  ;;  %v1162_v41 = vld [vmem:[#allocation9 + $0x120] sm:$0xff]  ;;  %v1184_v19 = vld [vmem:[#allocation9 + $0x1d0] sm:$0xff]  ;;  %v5545_v24 = vpack.c.bf16 %v1384_v17, %v1380_v16  ;;  %v5587_v16 = vpack.c.bf16 %v1417_v7, %v1413_v6 }
 0x4d2   : > { %v3720_v43 = vpack.c.bf16 %v1162_v41, %v1158_v40  ;;  %v1360_v40 = vld [vmem:[#allocation10 + $0x30] sm:$0xff]  ;;  %v1363_v41 = vld [vmem:[#allocation10 + $0x48] sm:$0xff]  ;;  %v1414_v17 = vld [vmem:[#allocation10 + $0x1e0] sm:$0xff] }
 0x4d3   : > { %v1104_v21 = vsel %vm1103_vm2, %v5494_v20, 0.0  ;;  %v5509_v49 = vpack.c.bf16 %v1360_v40, %v1356_v39  ;;  %v5511_v53 = vpack.c.bf16 %v1367_v42, %v1363_v41  ;;  %v1394_v39 = vld [vmem:[#allocation10 + $0x140] sm:$0xff] }
 0x4d4   : > { %v1105_v22 = vmul.f32 %v1104_v21, %v1104_v21  ;;  %3721 = vmatpush1.bf16.msra.mxu1 %v3720_v43  ;;  %v1188_v21 = vld [vmem:[#allocation9 + $0x1f0] sm:$0xff]  ;;  %v1365_v43 = vld [vmem:[#allocation10 + $0x58] sm:$0xff]  ;;  %v1398_v40 = vld [vmem:[#allocation10 + $0x160] sm:$0xff] }
 0x4d5   : > { %3723 = vmatprep.subr.bf16.mxu1 %v3722_v52  ;;  %v3764_v27 = vpack.c.bf16 %v1188_v21, %v1184_v19  ;;  %v5513_v54 = vpack.c.bf16 %v1369_v44, %v1365_v43  ;;  %v1391_v19 = vld [vmem:[#allocation10 + $0x128] sm:$0xff]  ;;  %v1389_v21 = vld [vmem:[#allocation10 + $0x118] sm:$0xff]  ;;  %v1396_v43 = vld [vmem:[#allocation10 + $0x150] sm:$0xff] }
 0x4d6   : > { %1106 = vadd.xlane.f32.xlu1 %v1105_v22  ;;  %v1355_v22 = vld [vmem:[#allocation10 + $0x8] sm:$0xff]  ;;  %v1400_v44 = vld [vmem:[#allocation10 + $0x170] sm:$0xff] }
 0x4d7   : > { %v5497_v28 = vpack.c.bf16 %v1359_v23, %v1355_v22  ;;  %3765 = vmatpush1.bf16.msra.mxu0 %v3764_v27  ;;  %v1393_v22 = vld [vmem:[#allocation10 + $0x138] sm:$0xff]  ;;  %v5549_v27 = vpack.c.bf16 %v1391_v19, %v1387_v18  ;;  %v1412_v18 = vld [vmem:[#allocation10 + $0x1d0] sm:$0xff] }
 0x4d8   : > { %3725 = vmatpush1.bf16.msra.mxu1 %v3724_v57  ;;  %3799 = vmatprep.subr.bf16.mxu0 %v5499_v29  ;;  %v1375_v57 = vld [vmem:[#allocation10 + $0xa8] sm:$0xff]  ;;  %v1416_v19 = vld [vmem:[#allocation10 + $0x1f0] sm:$0xff] }
 0x4d9   : > { %3727 = vmatprep.subr.bf16.mxu1 %v3726_v3  ;;  %v5523_v2 = vpack.c.bf16 %v1375_v57, %v1371_v56  ;;  %v5525_v3 = vpack.c.bf16 %v1377_v59, %v1373_v58  ;;  %v1402_v56 = vld [vmem:[#allocation10 + $0x180] sm:$0xff] }
 0x4da   : > { %v1406_v57 = vld [vmem:[#allocation10 + $0x1a0] sm:$0xff] }
 0x4dc   : > { %3729 = vmatpush1.bf16.msra.mxu1 %v3728_v8  ;;  %v1381_v8 = vld [vmem:[#allocation10 + $0xd8] sm:$0xff] }
 0x4dd   : > { %3731 = vmatprep.subr.bf16.mxu1 %v3730_v13  ;;  %v1382_v13 = vld [vmem:[#allocation10 + $0xe0] sm:$0xff]  ;;  %v5539_v15 = vpack.c.bf16 %v1385_v9, %v1381_v8  ;;  %v5579_v8 = vpack.c.bf16 %v1406_v57, %v1402_v56  ;;  %v5581_v9 = vpack.c.bf16 %v1408_v63, %v1404_v62 }
 0x4de   : > { %v5543_v23 = vpack.c.bf16 %v1382_v13, %v1378_v12  ;;  %v1410_v12 = vld [vmem:[#allocation10 + $0x1c0] sm:$0xff]  ;;  %v5585_v13 = vpack.c.bf16 %v1415_v5, %v1411_v4 }
 0x4e0   : > { %3733 = vmatpush1.bf16.msra.mxu1 %v3732_v25  ;;  %v1386_v25 = vld [vmem:[#allocation10 + $0x100] sm:$0xff] }
 0x4e1   : > { %3767 = vmatprep.subr.bf16.mxu1 %v5497_v28  ;;  %v5555_v37 = vpack.c.bf16 %v1390_v26, %v1386_v25  ;;  %v1193_v25 = vshrl.u32 %v886_v46, 7 }
 0x4e3   : > { %v1194_v26 = vsub.s32 0, %v1193_v25 }
 0x563   : > { %v1107_v30 = vpop.xlane.xlu1 %1106 }
 0x564   : > { %v1108_v31 = vmul.f32 0.015625, %v1107_v30  ;;  %v5551_v30 = vpack.c.bf16 %v1393_v22, %v1389_v21  ;;  %v5591_v21 = vpack.c.bf16 %v1414_v17, %v1410_v12  ;;  %v5593_v22 = vpack.c.bf16 %v1416_v19, %v1412_v18 }
 0x566   : > { %v1109_v32 = vadd.f32 1e-05, %v1108_v31  ;;  %v1388_v31 = vld [vmem:[#allocation10 + $0x110] sm:$0xff] }
 0x568   : > { %4454 = vrsqrt.f32 %v1109_v32  ;;  %v1392_v32 = vld [vmem:[#allocation10 + $0x130] sm:$0xff] }
 0x572   : > { %v4455_v34 = vpop.eup %4454 }
 0x573   : > { %v1111_v38 = vmul.f32 %v4455_v34, %v5494_v20  ;;  %v1368_v20 = vld [vmem:[#allocation10 + $0x70] sm:$0xff]  ;;  %v1399_v34 = vld [vmem:[#allocation10 + $0x168] sm:$0xff] }
 0x574   : > { %v5519_v61 = vpack.c.bf16 %v1368_v20, %v1364_v55  ;;  %v5567_v55 = vpack.c.bf16 %v1398_v40, %v1394_v39  ;;  %v5569_v20 = vpack.c.bf16 %v1400_v44, %v1396_v43 }
 0x575   : > { %v1118_v45 = vmul.f32 %v3338_v33, %v1111_v38  ;;  %v1395_v33 = vld [vmem:[#allocation10 + $0x148] sm:$0xff]  ;;  %v5557_v38 = vpack.c.bf16 %v1392_v32, %v1388_v31  ;;  %v1202_v31 = vsub.s32 2, %v1193_v25  ;;  %v1190_v32 = vld [vmem:[#allocation12] sm:$0xf] }
 0x576   : > { %v5561_v41 = vpack.c.bf16 %v1399_v34, %v1395_v33  ;;  %v1198_v33 = vsub.s32 1, %v1193_v25  ;;  %v1206_v34 = vsub.s32 3, %v1193_v25 }
 0x577   : > { %v1125_v52 = vadd.f32 %v3339_v35, %v1118_v45  ;;  %v1397_v35 = vld [vmem:[#allocation10 + $0x158] sm:$0xff]  ;;  %v1403_v45 = vld [vmem:[#allocation10 + $0x188] sm:$0xff] }
 0x578   : > { %v5563_v42 = vpack.c.bf16 %v1401_v36, %v1397_v35  ;;  %v5573_v58 = vpack.c.bf16 %v1407_v50, %v1403_v45  ;;  %v1195_v35 = vrot.slane %v1190_v32, %v1194_v26  ;;  %v1203_v36 = vrot.slane %v1190_v32, %v1202_v31 }
 0x579   : > { %1277 = vmatmul.mubr.f32.vlgmr.msra.gmra.mrb[2].mxu1 %v1125_v52  ;;  %1348 = vmatmul.mubr.f32.vlgmr.msra.gmra.mrb[4].mxu0 %v1125_v52  ;;  %v1409_v52 = vld [vmem:[#allocation10 + $0x1b8] sm:$0xff]  ;;  %v1199_v39 = vrot.slane %v1190_v32, %v1198_v33  ;;  %v1207_v40 = vrot.slane %v1190_v32, %v1206_v34 }
 0x57a   : > { %3769 = vmatpush1.bf16.msra.mxu1 %v5507_v48  ;;  %3801 = vmatpush1.bf16.msra.mxu0 %v5509_v49  ;;  %v5575_v59 = vpack.c.bf16 %v1409_v52, %v1405_v51 }
 0x57b   : > { %3771 = vmatprep.subr.bf16.mxu1 %v5511_v53  ;;  %3803 = vmatprep.subr.bf16.mxu0 %v5513_v54 }
 0x57c   : > { %1482 = vmatprep.mubr.f32.mxu1 %v4945_v1  ;;  %1553 = vmatprep.mubr.f32.mxu0 %v4945_v1 }
 0x57e   : > { %3773 = vmatpush1.bf16.msra.mxu1 %v5517_v60  ;;  %3805 = vmatpush1.bf16.msra.mxu0 %v5519_v61 }
 0x57f   : > { %3775 = vmatprep.subr.bf16.mxu1 %v5523_v2  ;;  %3807 = vmatprep.subr.bf16.mxu0 %v5525_v3 }
 0x582   : > { %3777 = vmatpush1.bf16.msra.mxu1 %v5531_v10  ;;  %3809 = vmatpush1.bf16.msra.mxu0 %v5533_v11 }
 0x583   : > { %3779 = vmatprep.subr.bf16.mxu1 %v5537_v14  ;;  %3811 = vmatprep.subr.bf16.mxu0 %v5539_v15 }
 0x586   : > { %3781 = vmatpush1.bf16.msra.mxu1 %v5543_v23  ;;  %3813 = vmatpush1.bf16.msra.mxu0 %v5545_v24 }
 0x587   : > { %3783 = vmatprep.subr.bf16.mxu1 %v5549_v27  ;;  %3815 = vmatprep.subr.bf16.mxu0 %v5551_v30 }
 0x58a   : > { %3785 = vmatpush1.bf16.msra.mxu1 %v5555_v37  ;;  %3817 = vmatpush1.bf16.msra.mxu0 %v5557_v38 }
 0x58b   : > { %3787 = vmatprep.subr.bf16.mxu1 %v5561_v41  ;;  %3819 = vmatprep.subr.bf16.mxu0 %v5563_v42 }
 0x58e   : > { %3789 = vmatpush1.bf16.msra.mxu1 %v5567_v55  ;;  %3821 = vmatpush1.bf16.msra.mxu0 %v5569_v20 }
 0x58f   : > { %3791 = vmatprep.subr.bf16.mxu1 %v5573_v58  ;;  %3823 = vmatprep.subr.bf16.mxu0 %v5575_v59 }
 0x592   : > { %3793 = vmatpush1.bf16.msra.mxu1 %v5579_v8  ;;  %3825 = vmatpush1.bf16.msra.mxu0 %v5581_v9 }
 0x593   : > { %3795 = vmatprep.subr.bf16.mxu1 %v5585_v13  ;;  %3827 = vmatprep.subr.bf16.mxu0 %v5587_v16 }
 0x596   : > { %3797 = vmatpush1.bf16.msra.mxu1 %v5591_v21  ;;  %3829 = vmatpush1.bf16.msra.mxu0 %v5593_v22 }
 0x597   : > { %3831 = vmatprep.subr.bf16.mxu1 %v5497_v28  ;;  %3863 = vmatprep.subr.bf16.mxu0 %v5499_v29 }
 0x599   : > { %1483 = vmatmul.mubr.f32.vlgmr.msra.gmra.mrb[4].mxu1 %v4945_v1  ;;  %1554 = vmatmul.mubr.f32.vlgmr.msra.gmra.mrb[6].mxu0 %v4945_v1 }
 0x59a   : > { %3833 = vmatpush1.bf16.msra.mxu1 %v5507_v48  ;;  %3865 = vmatpush1.bf16.msra.mxu0 %v5509_v49 }
 0x59b   : > { %3835 = vmatprep.subr.bf16.mxu1 %v5511_v53  ;;  %3867 = vmatprep.subr.bf16.mxu0 %v5513_v54 }
 0x59c   : > { %1652 = vmatprep.mubr.f32.mxu1 %v4945_v1  ;;  %1723 = vmatprep.mubr.f32.mxu0 %v4945_v1 }
 0x59e   : > { %3837 = vmatpush1.bf16.msra.mxu1 %v5517_v60  ;;  %3869 = vmatpush1.bf16.msra.mxu0 %v5519_v61 }
 0x59f   : > { %3839 = vmatprep.subr.bf16.mxu1 %v5523_v2  ;;  %3871 = vmatprep.subr.bf16.mxu0 %v5525_v3 }
 0x5a2   : > { %3841 = vmatpush1.bf16.msra.mxu1 %v5531_v10  ;;  %3873 = vmatpush1.bf16.msra.mxu0 %v5533_v11 }
 0x5a3   : > { %3843 = vmatprep.subr.bf16.mxu1 %v5537_v14  ;;  %3875 = vmatprep.subr.bf16.mxu0 %v5539_v15 }
 0x5a6   : > { %3845 = vmatpush1.bf16.msra.mxu1 %v5543_v23  ;;  %3877 = vmatpush1.bf16.msra.mxu0 %v5545_v24 }
 0x5a7   : > { %3847 = vmatprep.subr.bf16.mxu1 %v5549_v27  ;;  %3879 = vmatprep.subr.bf16.mxu0 %v5551_v30 }
 0x5aa   : > { %3849 = vmatpush1.bf16.msra.mxu1 %v5555_v37  ;;  %3881 = vmatpush1.bf16.msra.mxu0 %v5557_v38 }
 0x5ab   : > { %3851 = vmatprep.subr.bf16.mxu1 %v5561_v41  ;;  %3883 = vmatprep.subr.bf16.mxu0 %v5563_v42 }
 0x5ae   : > { %3853 = vmatpush1.bf16.msra.mxu1 %v5567_v55  ;;  %3885 = vmatpush1.bf16.msra.mxu0 %v5569_v20 }
 0x5af   : > { %3855 = vmatprep.subr.bf16.mxu1 %v5573_v58  ;;  %3887 = vmatprep.subr.bf16.mxu0 %v5575_v59 }
 0x5b2   : > { %3857 = vmatpush1.bf16.msra.mxu1 %v5579_v8  ;;  %3889 = vmatpush1.bf16.msra.mxu0 %v5581_v9 }
 0x5b3   : > { %3859 = vmatprep.subr.bf16.mxu1 %v5585_v13  ;;  %3891 = vmatprep.subr.bf16.mxu0 %v5587_v16 }
 0x5b6   : > { %3861 = vmatpush1.bf16.msra.mxu1 %v5591_v21  ;;  %3893 = vmatpush1.bf16.msra.mxu0 %v5593_v22 }
 0x5b7   : > { %3895 = vmatprep.subr.bf16.mxu1 %v5497_v28  ;;  %3927 = vmatprep.subr.bf16.mxu0 %v5499_v29 }
 0x64c   : > { %v1278_v43 = vpop.f32.mrb[2].mxu1  ;;  %v1349_v44 = vpop.f32.mrb[4].mxu0 }
 0x64d   : > { %v5638_v45 = vadd.f32 %v1278_v43, %v1195_v35  ;;  %v5640_v50 = vadd.f32 %v1349_v44, %v1203_v36  ;;  %v1280_v51 = vpop.f32.mrb[3].mxu1  ;;  %v1351_v52 = vpop.f32.mrb[5].mxu0 }
 0x64e   : > { %v5642_v56 = vadd.f32 %v1280_v51, %v1199_v39  ;;  %v5644_v46 = vadd.f32 %v1351_v52, %v1207_v40 }
 0x66c   : > { %v1484_v57 = vpop.f32.mrb[4].mxu1  ;;  %v1555_v62 = vpop.f32.mrb[6].mxu0 }
 0x66d   : > { %v1560_v63 = vadd.f32 %v1484_v57, %v5638_v45  ;;  %v1486_v4 = vpop.f32.mrb[5].mxu1  ;;  %v1557_v5 = vpop.f32.mrb[7].mxu0  ;;  %v1562_v17 = vadd.f32 %v1555_v62, %v5640_v50 }
 0x66e   : > { %v1561_v6 = vadd.f32 %v1486_v4, %v5642_v56  ;;  %v1563_v18 = vadd.f32 %v1557_v5, %v5644_v46 }
 0x66f   : > { %v3340_v7 = vmul.f32 -1.442695, %v1560_v63  ;;  %v3342_v19 = vmul.f32 -1.442695, %v1562_v17 }
 0x670   : > { %v3341_v12 = vmul.f32 -1.442695, %v1561_v6 }
 0x671   : > { %4456 = vpow2.f32 %v3340_v7 }
 0x672   : > { %4458 = vpow2.f32 %v3341_v12 }
 0x673   : > { %4460 = vtanh.f32 %v1563_v18 }
 0x674   : > { %4462 = vpow2.f32 %v3342_v19 }
 0x67b   : > { %v4457_v25 = vpop.eup %4456 }
 0x67c   : > { %v1573_v26 = vadd.f32 1.0, %v4457_v25  ;;  %v4459_v31 = vpop.eup %4458 }
 0x67d   : > { %v1574_v32 = vadd.f32 1.0, %v4459_v31  ;;  %v4461_v33 = vpop.eup %4460 }
 0x67e   : > { %4464 = vrcp.f32 %v1573_v26  ;;  %v4463_v34 = vpop.eup %4462 }
 0x67f   : > { %4466 = vrcp.f32 %v1574_v32  ;;  %v1575_v40 = vadd.f32 1.0, %v4463_v34 }
 0x681   : > { %4468 = vrcp.f32 %v1575_v40 }
 0x688   : > { %v4465_v35 = vpop.eup %4464 }
 0x689   : > { %v1584_v36 = vmul.f32 %v4465_v35, %v4461_v33  ;;  %v4467_v39 = vpop.eup %4466 }
 0x68a   : > { %v1583_v43 = vmul.f32 0.0, %v4467_v39 }
 0x68b   : > { %v4469_v51 = vpop.eup %4468 }
 0x68c   : > { %v5650_v44 = vadd.f32 %v1584_v36, %v1583_v43 }
 0x68e   : > { %4470 = vtanh.f32 %v5650_v44 }
 0x698   : > { %v4471_v52 = vpop.eup %4470 }
 0x699   : > { %v5653_v57 = vmul.f32 %v4471_v52, %v4469_v51  ;;  %v1766_v52 = vrot.slane %v5650_v44, 7 }
 0x69b   : > { %1653 = vmatmul.mubr.f32.vlgmr.msra.gmra.mrb[6].mxu1 %v5653_v57  ;;  %1724 = vmatmul.mubr.f32.vlgmr.msra.gmra.mrb[8].mxu0 %v5653_v57 }
 0x69c   : > { %3897 = vmatpush1.bf16.msra.mxu1 %v5507_v48  ;;  %3929 = vmatpush1.bf16.msra.mxu0 %v5509_v49 }
 0x69d   : > { %3899 = vmatprep.subr.bf16.mxu1 %v5511_v53  ;;  %3931 = vmatprep.subr.bf16.mxu0 %v5513_v54 }
 0x69e   : > { %1840 = vmatprep.mubr.f32.mxu1 %v4945_v1  ;;  %1911 = vmatprep.mubr.f32.mxu0 %v4945_v1 }
 0x6a0   : > { %3901 = vmatpush1.bf16.msra.mxu1 %v5517_v60  ;;  %3933 = vmatpush1.bf16.msra.mxu0 %v5519_v61 }
 0x6a1   : > { %3903 = vmatprep.subr.bf16.mxu1 %v5523_v2  ;;  %3935 = vmatprep.subr.bf16.mxu0 %v5525_v3 }
 0x6a4   : > { %3905 = vmatpush1.bf16.msra.mxu1 %v5531_v10  ;;  %3937 = vmatpush1.bf16.msra.mxu0 %v5533_v11 }
 0x6a5   : > { %3907 = vmatprep.subr.bf16.mxu1 %v5537_v14  ;;  %3939 = vmatprep.subr.bf16.mxu0 %v5539_v15 }
 0x6a8   : > { %3909 = vmatpush1.bf16.msra.mxu1 %v5543_v23  ;;  %3941 = vmatpush1.bf16.msra.mxu0 %v5545_v24 }
 0x6a9   : > { %3911 = vmatprep.subr.bf16.mxu1 %v5549_v27  ;;  %3943 = vmatprep.subr.bf16.mxu0 %v5551_v30 }
 0x6ac   : > { %3913 = vmatpush1.bf16.msra.mxu1 %v5555_v37  ;;  %3945 = vmatpush1.bf16.msra.mxu0 %v5557_v38 }
 0x6ad   : > { %3915 = vmatprep.subr.bf16.mxu1 %v5561_v41  ;;  %3947 = vmatprep.subr.bf16.mxu0 %v5563_v42 }
 0x6b0   : > { %3917 = vmatpush1.bf16.msra.mxu1 %v5567_v55  ;;  %3949 = vmatpush1.bf16.msra.mxu0 %v5569_v20 }
 0x6b1   : > { %3919 = vmatprep.subr.bf16.mxu1 %v5573_v58  ;;  %3951 = vmatprep.subr.bf16.mxu0 %v5575_v59 }
 0x6b4   : > { %3921 = vmatpush1.bf16.msra.mxu1 %v5579_v8  ;;  %3953 = vmatpush1.bf16.msra.mxu0 %v5581_v9 }
 0x6b5   : > { %3923 = vmatprep.subr.bf16.mxu1 %v5585_v13  ;;  %3955 = vmatprep.subr.bf16.mxu0 %v5587_v16 }
 0x6b8   : > { %3925 = vmatpush1.bf16.msra.mxu1 %v5591_v21  ;;  %3957 = vmatpush1.bf16.msra.mxu0 %v5593_v22 }
 0x6b9   : > { %3959 = vmatprep.subr.bf16.mxu1 %v5497_v28  ;;  %3991 = vmatprep.subr.bf16.mxu0 %v5499_v29 }
 0x76e   : > { %v1654_v62 = vpop.f32.mrb[6].mxu1  ;;  %v1725_v63 = vpop.f32.mrb[8].mxu0 }
 0x76f   : > { %v1734_v4 = vrot.slane %v1654_v62, 7  ;;  %v1656_v5 = vpop.f32.mrb[7].mxu1  ;;  %v1727_v6 = vpop.f32.mrb[9].mxu0  ;;  %v1736_v25 = vrot.slane %v1725_v63, 7 }
 0x770   : > { %v1735_v7 = vrot.slane %v1656_v5, 7  ;;  %v1737_v26 = vrot.slane %v1727_v6, 7 }
 0x771   : > { %v1742_v12 = vadd.f32 %v1734_v4, %v5638_v45  ;;  %v1744_v31 = vadd.f32 %v1736_v25, %v5640_v50 }
 0x772   : > { %v1743_v17 = vadd.f32 %v1735_v7, %v5642_v56  ;;  %v1745_v32 = vadd.f32 %v1737_v26, %v5644_v46 }
 0x773   : > { %v3343_v18 = vmul.f32 -1.442695, %v1742_v12  ;;  %v3345_v33 = vmul.f32 -1.442695, %v1744_v31 }
 0x774   : > { %v3344_v19 = vmul.f32 -1.442695, %v1743_v17 }
 0x775   : > { %4472 = vpow2.f32 %v3343_v18 }
 0x776   : > { %4474 = vpow2.f32 %v3344_v19 }
 0x777   : > { %4476 = vtanh.f32 %v1745_v32 }
 0x778   : > { %4478 = vpow2.f32 %v3345_v33 }
 0x77f   : > { %v4473_v34 = vpop.eup %4472 }
 0x780   : > { %v1755_v35 = vadd.f32 1.0, %v4473_v34  ;;  %v4475_v36 = vpop.eup %4474 }
 0x781   : > { %v1756_v39 = vadd.f32 1.0, %v4475_v36  ;;  %v4477_v40 = vpop.eup %4476 }
 0x782   : > { %4480 = vrcp.f32 %v1755_v35  ;;  %v4479_v43 = vpop.eup %4478 }
 0x783   : > { %4482 = vrcp.f32 %v1756_v39  ;;  %v1757_v4 = vadd.f32 1.0, %v4479_v43 }
 0x785   : > { %4484 = vrcp.f32 %v1757_v4 }
 0x78c   : > { %v4481_v51 = vpop.eup %4480 }
 0x78d   : > { %v1769_v62 = vmul.f32 %v4481_v51, %v4477_v40  ;;  %v4483_v63 = vpop.eup %4482 }
 0x78e   : > { %v1768_v5 = vmul.f32 %v4483_v63, %v1766_v52 }
 0x78f   : > { %v4485_v7 = vpop.eup %4484 }
 0x790   : > { %v5696_v6 = vadd.f32 %v1769_v62, %v1768_v5 }
 0x792   : > { %4486 = vtanh.f32 %v5696_v6 }
 0x79c   : > { %v4487_v12 = vpop.eup %4486 }
 0x79d   : > { %v5699_v17 = vmul.f32 %v4487_v12, %v4485_v7 }
 0x79f   : > { %v1774_v18 = vrot.slane %v5699_v17, 1 }
 0x7a1   : > { %1841 = vmatmul.mubr.f32.vlgmr.msra.gmra.mrb[8].mxu1 %v1774_v18  ;;  %1912 = vmatmul.mubr.f32.vlgmr.msra.gmra.mrb[10].mxu0 %v1774_v18 }
 0x7a2   : > { %3961 = vmatpush1.bf16.msra.mxu1 %v5507_v48  ;;  %3993 = vmatpush1.bf16.msra.mxu0 %v5509_v49 }
 0x7a3   : > { %3963 = vmatprep.subr.bf16.mxu1 %v5511_v53  ;;  %3995 = vmatprep.subr.bf16.mxu0 %v5513_v54 }
 0x7a4   : > { %2028 = vmatprep.mubr.f32.mxu1 %v4945_v1  ;;  %2099 = vmatprep.mubr.f32.mxu0 %v4945_v1 }
 0x7a6   : > { %3965 = vmatpush1.bf16.msra.mxu1 %v5517_v60  ;;  %3997 = vmatpush1.bf16.msra.mxu0 %v5519_v61 }
 0x7a7   : > { %3967 = vmatprep.subr.bf16.mxu1 %v5523_v2  ;;  %3999 = vmatprep.subr.bf16.mxu0 %v5525_v3 }
 0x7aa   : > { %3969 = vmatpush1.bf16.msra.mxu1 %v5531_v10  ;;  %4001 = vmatpush1.bf16.msra.mxu0 %v5533_v11 }
 0x7ab   : > { %3971 = vmatprep.subr.bf16.mxu1 %v5537_v14  ;;  %4003 = vmatprep.subr.bf16.mxu0 %v5539_v15 }
 0x7ae   : > { %3973 = vmatpush1.bf16.msra.mxu1 %v5543_v23  ;;  %4005 = vmatpush1.bf16.msra.mxu0 %v5545_v24 }
 0x7af   : > { %3975 = vmatprep.subr.bf16.mxu1 %v5549_v27  ;;  %4007 = vmatprep.subr.bf16.mxu0 %v5551_v30 }
 0x7b2   : > { %3977 = vmatpush1.bf16.msra.mxu1 %v5555_v37  ;;  %4009 = vmatpush1.bf16.msra.mxu0 %v5557_v38 }
 0x7b3   : > { %3979 = vmatprep.subr.bf16.mxu1 %v5561_v41  ;;  %4011 = vmatprep.subr.bf16.mxu0 %v5563_v42 }
 0x7b6   : > { %3981 = vmatpush1.bf16.msra.mxu1 %v5567_v55  ;;  %4013 = vmatpush1.bf16.msra.mxu0 %v5569_v20 }
 0x7b7   : > { %3983 = vmatprep.subr.bf16.mxu1 %v5573_v58  ;;  %4015 = vmatprep.subr.bf16.mxu0 %v5575_v59 }
 0x7ba   : > { %3985 = vmatpush1.bf16.msra.mxu1 %v5579_v8  ;;  %4017 = vmatpush1.bf16.msra.mxu0 %v5581_v9 }
 0x7bb   : > { %3987 = vmatprep.subr.bf16.mxu1 %v5585_v13  ;;  %4019 = vmatprep.subr.bf16.mxu0 %v5587_v16 }
 0x7be   : > { %3989 = vmatpush1.bf16.msra.mxu1 %v5591_v21  ;;  %4021 = vmatpush1.bf16.msra.mxu0 %v5593_v22 }
 0x7bf   : > { %4023 = vmatprep.subr.bf16.mxu1 %v5497_v28  ;;  %4055 = vmatprep.subr.bf16.mxu0 %v5499_v29 }
 0x874   : > { %v1842_v44 = vpop.f32.mrb[8].mxu1  ;;  %v1913_v19 = vpop.f32.mrb[10].mxu0 }
 0x875   : > { %v1922_v25 = vrot.slane %v1842_v44, 6  ;;  %v1844_v26 = vpop.f32.mrb[9].mxu1  ;;  %v1915_v31 = vpop.f32.mrb[11].mxu0  ;;  %v1924_v39 = vrot.slane %v1913_v19, 6  ;;  %v1954_v44 = vrot.slane %v5696_v6, 7 }
 0x876   : > { %v1923_v32 = vrot.slane %v1844_v26, 6  ;;  %v1925_v40 = vrot.slane %v1915_v31, 6 }
 0x877   : > { %v1930_v33 = vadd.f32 %v1922_v25, %v5638_v45  ;;  %v1932_v43 = vadd.f32 %v1924_v39, %v5640_v50 }
 0x878   : > { %v1931_v34 = vadd.f32 %v1923_v32, %v5642_v56  ;;  %v1933_v51 = vadd.f32 %v1925_v40, %v5644_v46 }
 0x879   : > { %v3346_v35 = vmul.f32 -1.442695, %v1930_v33  ;;  %v3348_v52 = vmul.f32 -1.442695, %v1932_v43 }
 0x87a   : > { %v3347_v36 = vmul.f32 -1.442695, %v1931_v34 }
 0x87b   : > { %4488 = vpow2.f32 %v3346_v35 }
 0x87c   : > { %4490 = vpow2.f32 %v3347_v36  ;;  %v2902_v36 = vsel %vm2901_vm3, %v5653_v57, %v5699_v17 }
 0x87d   : > { %4492 = vtanh.f32 %v1933_v51 }
 0x87e   : > { %4494 = vpow2.f32 %v3348_v52 }
 0x885   : > { %v4489_v62 = vpop.eup %4488 }
 0x886   : > { %v1943_v63 = vadd.f32 1.0, %v4489_v62  ;;  %v4491_v4 = vpop.eup %4490 }
 0x887   : > { %v1944_v5 = vadd.f32 1.0, %v4491_v4  ;;  %v4493_v7 = vpop.eup %4492 }
 0x888   : > { %4496 = vrcp.f32 %v1943_v63  ;;  %v4495_v12 = vpop.eup %4494 }
 0x889   : > { %4498 = vrcp.f32 %v1944_v5  ;;  %v1945_v26 = vadd.f32 1.0, %v4495_v12 }
 0x88b   : > { %4500 = vrcp.f32 %v1945_v26 }
 0x892   : > { %v4497_v18 = vpop.eup %4496 }
 0x893   : > { %v1957_v19 = vmul.f32 %v4497_v18, %v4493_v7  ;;  %v4499_v25 = vpop.eup %4498 }
 0x894   : > { %v1956_v31 = vmul.f32 %v4499_v25, %v1954_v44 }
 0x895   : > { %v4501_v33 = vpop.eup %4500 }
 0x896   : > { %v5741_v32 = vadd.f32 %v1957_v19, %v1956_v31 }
 0x898   : > { %4502 = vtanh.f32 %v5741_v32 }
 0x8a2   : > { %v4503_v34 = vpop.eup %4502 }
 0x8a3   : > { %v1960_v35 = vmul.f32 %v4503_v34, %v4501_v33 }
 0x8a5   : > { %v1962_v39 = vrot.slane %v1960_v35, 2  ;;  %v5746_v40 = vsel %vm2903_vm4, %v2902_v36, %v1960_v35 }
 0x8a7   : > { %2029 = vmatmul.mubr.f32.vlgmr.msra.gmra.mrb[10].mxu1 %v1962_v39  ;;  %2100 = vmatmul.mubr.f32.vlgmr.msra.gmra.mrb[12].mxu0 %v1962_v39  ;;  %v2142_v39 = vrot.slane %v5741_v32, 7 }
 0x8a8   : > { %4025 = vmatpush1.bf16.msra.mxu1 %v5507_v48  ;;  %4057 = vmatpush1.bf16.msra.mxu0 %v5509_v49 }
 0x8a9   : > { %4027 = vmatprep.subr.bf16.mxu1 %v5511_v53  ;;  %4059 = vmatprep.subr.bf16.mxu0 %v5513_v54 }
 0x8aa   : > { %2216 = vmatprep.mubr.f32.mxu1 %v4945_v1  ;;  %2287 = vmatprep.mubr.f32.mxu0 %v4945_v1 }
 0x8ac   : > { %4029 = vmatpush1.bf16.msra.mxu1 %v5517_v60  ;;  %4061 = vmatpush1.bf16.msra.mxu0 %v5519_v61 }
 0x8ad   : > { %4031 = vmatprep.subr.bf16.mxu1 %v5523_v2  ;;  %4063 = vmatprep.subr.bf16.mxu0 %v5525_v3 }
 0x8b0   : > { %4033 = vmatpush1.bf16.msra.mxu1 %v5531_v10  ;;  %4065 = vmatpush1.bf16.msra.mxu0 %v5533_v11 }
 0x8b1   : > { %4035 = vmatprep.subr.bf16.mxu1 %v5537_v14  ;;  %4067 = vmatprep.subr.bf16.mxu0 %v5539_v15 }
 0x8b4   : > { %4037 = vmatpush1.bf16.msra.mxu1 %v5543_v23  ;;  %4069 = vmatpush1.bf16.msra.mxu0 %v5545_v24 }
 0x8b5   : > { %4039 = vmatprep.subr.bf16.mxu1 %v5549_v27  ;;  %4071 = vmatprep.subr.bf16.mxu0 %v5551_v30 }
 0x8b8   : > { %4041 = vmatpush1.bf16.msra.mxu1 %v5555_v37  ;;  %4073 = vmatpush1.bf16.msra.mxu0 %v5557_v38 }
 0x8b9   : > { %4043 = vmatprep.subr.bf16.mxu1 %v5561_v41  ;;  %4075 = vmatprep.subr.bf16.mxu0 %v5563_v42 }
 0x8bc   : > { %4045 = vmatpush1.bf16.msra.mxu1 %v5567_v55  ;;  %4077 = vmatpush1.bf16.msra.mxu0 %v5569_v20 }
 0x8bd   : > { %4047 = vmatprep.subr.bf16.mxu1 %v5573_v58  ;;  %4079 = vmatprep.subr.bf16.mxu0 %v5575_v59 }
 0x8c0   : > { %4049 = vmatpush1.bf16.msra.mxu1 %v5579_v8  ;;  %4081 = vmatpush1.bf16.msra.mxu0 %v5581_v9 }
 0x8c1   : > { %4051 = vmatprep.subr.bf16.mxu1 %v5585_v13  ;;  %4083 = vmatprep.subr.bf16.mxu0 %v5587_v16 }
 0x8c4   : > { %4053 = vmatpush1.bf16.msra.mxu1 %v5591_v21  ;;  %4085 = vmatpush1.bf16.msra.mxu0 %v5593_v22 }
 0x8c5   : > { %4087 = vmatprep.subr.bf16.mxu1 %v5497_v28  ;;  %4119 = vmatprep.subr.bf16.mxu0 %v5499_v29 }
 0x97a   : > { %v2030_v57 = vpop.f32.mrb[10].mxu1  ;;  %v2101_v6 = vpop.f32.mrb[12].mxu0 }
 0x97b   : > { %v2110_v17 = vrot.slane %v2030_v57, 5  ;;  %v2032_v43 = vpop.f32.mrb[11].mxu1  ;;  %v2103_v51 = vpop.f32.mrb[13].mxu0  ;;  %v2112_v7 = vrot.slane %v2101_v6, 5 }
 0x97c   : > { %v2111_v52 = vrot.slane %v2032_v43, 5  ;;  %v2113_v12 = vrot.slane %v2103_v51, 5 }
 0x97d   : > { %v2118_v62 = vadd.f32 %v2110_v17, %v5638_v45  ;;  %v2120_v18 = vadd.f32 %v2112_v7, %v5640_v50 }
 0x97e   : > { %v2119_v63 = vadd.f32 %v2111_v52, %v5642_v56  ;;  %v2121_v44 = vadd.f32 %v2113_v12, %v5644_v46 }
 0x97f   : > { %v3349_v4 = vmul.f32 -1.442695, %v2118_v62  ;;  %v3351_v19 = vmul.f32 -1.442695, %v2120_v18 }
 0x980   : > { %v3350_v5 = vmul.f32 -1.442695, %v2119_v63 }
 0x981   : > { %4504 = vpow2.f32 %v3349_v4 }
 0x982   : > { %4506 = vpow2.f32 %v3350_v5 }
 0x983   : > { %4508 = vtanh.f32 %v2121_v44 }
 0x984   : > { %4510 = vpow2.f32 %v3351_v19 }
 0x98b   : > { %v4505_v25 = vpop.eup %4504 }
 0x98c   : > { %v2131_v26 = vadd.f32 1.0, %v4505_v25  ;;  %v4507_v31 = vpop.eup %4506 }
 0x98d   : > { %v2132_v33 = vadd.f32 1.0, %v4507_v31  ;;  %v4509_v34 = vpop.eup %4508 }
 0x98e   : > { %4512 = vrcp.f32 %v2131_v26  ;;  %v4511_v35 = vpop.eup %4510 }
 0x98f   : > { %4514 = vrcp.f32 %v2132_v33  ;;  %v2133_v17 = vadd.f32 1.0, %v4511_v35 }
 0x991   : > { %4516 = vrcp.f32 %v2133_v17 }
 0x998   : > { %v4513_v36 = vpop.eup %4512 }
 0x999   : > { %v2145_v57 = vmul.f32 %v4513_v36, %v4509_v34  ;;  %v4515_v6 = vpop.eup %4514 }
 0x99a   : > { %v2144_v43 = vmul.f32 %v4515_v6, %v2142_v39 }
 0x99b   : > { %v4517_v52 = vpop.eup %4516 }
 0x99c   : > { %v5787_v51 = vadd.f32 %v2145_v57, %v2144_v43 }
 0x99e   : > { %4518 = vtanh.f32 %v5787_v51 }
 0x9a8   : > { %v4519_v62 = vpop.eup %4518 }
 0x9a9   : > { %v2148_v63 = vmul.f32 %v4519_v62, %v4517_v52 }
 0x9ab   : > { %v2150_v4 = vrot.slane %v2148_v63, 3  ;;  %v5791_v5 = vsel %vm2905_vm5, %v5746_v40, %v2148_v63 }
 0x9ad   : > { %2217 = vmatmul.mubr.f32.vlgmr.msra.gmra.mrb[12].mxu1 %v2150_v4  ;;  %2288 = vmatmul.mubr.f32.vlgmr.msra.gmra.mrb[14].mxu0 %v2150_v4  ;;  %v2330_v4 = vrot.slane %v5787_v51, 7 }
 0x9ae   : > { %4089 = vmatpush1.bf16.msra.mxu1 %v5507_v48  ;;  %4121 = vmatpush1.bf16.msra.mxu0 %v5509_v49 }
 0x9af   : > { %4091 = vmatprep.subr.bf16.mxu1 %v5511_v53  ;;  %4123 = vmatprep.subr.bf16.mxu0 %v5513_v54 }
 0x9b0   : > { %2404 = vmatprep.mubr.f32.mxu1 %v4945_v1  ;;  %2475 = vmatprep.mubr.f32.mxu0 %v4945_v1 }
 0x9b2   : > { %4093 = vmatpush1.bf16.msra.mxu1 %v5517_v60  ;;  %4125 = vmatpush1.bf16.msra.mxu0 %v5519_v61 }
 0x9b3   : > { %4095 = vmatprep.subr.bf16.mxu1 %v5523_v2  ;;  %4127 = vmatprep.subr.bf16.mxu0 %v5525_v3 }
 0x9b6   : > { %4097 = vmatpush1.bf16.msra.mxu1 %v5531_v10  ;;  %4129 = vmatpush1.bf16.msra.mxu0 %v5533_v11 }
 0x9b7   : > { %4099 = vmatprep.subr.bf16.mxu1 %v5537_v14  ;;  %4131 = vmatprep.subr.bf16.mxu0 %v5539_v15 }
 0x9ba   : > { %4101 = vmatpush1.bf16.msra.mxu1 %v5543_v23  ;;  %4133 = vmatpush1.bf16.msra.mxu0 %v5545_v24 }
 0x9bb   : > { %4103 = vmatprep.subr.bf16.mxu1 %v5549_v27  ;;  %4135 = vmatprep.subr.bf16.mxu0 %v5551_v30 }
 0x9be   : > { %4105 = vmatpush1.bf16.msra.mxu1 %v5555_v37  ;;  %4137 = vmatpush1.bf16.msra.mxu0 %v5557_v38 }
 0x9bf   : > { %4107 = vmatprep.subr.bf16.mxu1 %v5561_v41  ;;  %4139 = vmatprep.subr.bf16.mxu0 %v5563_v42 }
 0x9c2   : > { %4109 = vmatpush1.bf16.msra.mxu1 %v5567_v55  ;;  %4141 = vmatpush1.bf16.msra.mxu0 %v5569_v20 }
 0x9c3   : > { %4111 = vmatprep.subr.bf16.mxu1 %v5573_v58  ;;  %4143 = vmatprep.subr.bf16.mxu0 %v5575_v59 }
 0x9c6   : > { %4113 = vmatpush1.bf16.msra.mxu1 %v5579_v8  ;;  %4145 = vmatpush1.bf16.msra.mxu0 %v5581_v9 }
 0x9c7   : > { %4115 = vmatprep.subr.bf16.mxu1 %v5585_v13  ;;  %4147 = vmatprep.subr.bf16.mxu0 %v5587_v16 }
 0x9ca   : > { %4117 = vmatpush1.bf16.msra.mxu1 %v5591_v21  ;;  %4149 = vmatpush1.bf16.msra.mxu0 %v5593_v22 }
 0x9cb   : > { %4151 = vmatprep.subr.bf16.mxu1 %v5497_v28  ;;  %4183 = vmatprep.subr.bf16.mxu0 %v5499_v29 }
 0xa80   : > { %v2218_v32 = vpop.f32.mrb[12].mxu1  ;;  %v2289_v40 = vpop.f32.mrb[14].mxu0 }
 0xa81   : > { %v2298_v7 = vrot.slane %v2218_v32, 4  ;;  %v2220_v12 = vpop.f32.mrb[13].mxu1  ;;  %v2291_v18 = vpop.f32.mrb[15].mxu0  ;;  %v2300_v33 = vrot.slane %v2289_v40, 4 }
 0xa82   : > { %v2299_v44 = vrot.slane %v2220_v12, 4  ;;  %v2301_v34 = vrot.slane %v2291_v18, 4 }
 0xa83   : > { %v2306_v19 = vadd.f32 %v2298_v7, %v5638_v45  ;;  %v2308_v35 = vadd.f32 %v2300_v33, %v5640_v50 }
 0xa84   : > { %v2307_v25 = vadd.f32 %v2299_v44, %v5642_v56  ;;  %v2309_v36 = vadd.f32 %v2301_v34, %v5644_v46 }
 0xa85   : > { %v3352_v26 = vmul.f32 -1.442695, %v2306_v19  ;;  %v3354_v39 = vmul.f32 -1.442695, %v2308_v35 }
 0xa86   : > { %v3353_v31 = vmul.f32 -1.442695, %v2307_v25 }
 0xa87   : > { %4520 = vpow2.f32 %v3352_v26 }
 0xa88   : > { %4522 = vpow2.f32 %v3353_v31 }
 0xa89   : > { %4524 = vtanh.f32 %v2309_v36 }
 0xa8a   : > { %4526 = vpow2.f32 %v3354_v39 }
 0xa91   : > { %v4521_v57 = vpop.eup %4520 }
 0xa92   : > { %v2319_v6 = vadd.f32 1.0, %v4521_v57  ;;  %v4523_v17 = vpop.eup %4522 }
 0xa93   : > { %v2320_v43 = vadd.f32 1.0, %v4523_v17  ;;  %v4525_v52 = vpop.eup %4524 }
 0xa94   : > { %4528 = vrcp.f32 %v2319_v6  ;;  %v4527_v62 = vpop.eup %4526 }
 0xa95   : > { %4530 = vrcp.f32 %v2320_v43  ;;  %v2321_v7 = vadd.f32 1.0, %v4527_v62 }
 0xa97   : > { %4532 = vrcp.f32 %v2321_v7 }
 0xa9e   : > { %v4529_v63 = vpop.eup %4528 }
 0xa9f   : > { %v2333_v32 = vmul.f32 %v4529_v63, %v4525_v52  ;;  %v4531_v40 = vpop.eup %4530 }
 0xaa0   : > { %v2332_v12 = vmul.f32 %v4531_v40, %v2330_v4 }
 0xaa1   : > { %v4533_v44 = vpop.eup %4532 }
 0xaa2   : > { %v5832_v18 = vadd.f32 %v2333_v32, %v2332_v12 }
 0xaa4   : > { %4534 = vtanh.f32 %v5832_v18 }
 0xaae   : > { %v4535_v19 = vpop.eup %4534 }
 0xaaf   : > { %v2336_v25 = vmul.f32 %v4535_v19, %v4533_v44  ;;  %v2518_v19 = vrot.slane %v5832_v18, 7 }
 0xab1   : > { %v2338_v26 = vrot.slane %v2336_v25, 4  ;;  %v5836_v31 = vsel %vm2907_vm6, %v5791_v5, %v2336_v25 }
 0xab3   : > { %2405 = vmatmul.mubr.f32.vlgmr.msra.gmra.mrb[14].mxu1 %v2338_v26  ;;  %2476 = vmatmul.mubr.f32.vlgmr.msra.gmra.mrb[16].mxu0 %v2338_v26 }
 0xab4   : > { %4153 = vmatpush1.bf16.msra.mxu1 %v5507_v48  ;;  %4185 = vmatpush1.bf16.msra.mxu0 %v5509_v49 }
 0xab5   : > { %4155 = vmatprep.subr.bf16.mxu1 %v5511_v53  ;;  %4187 = vmatprep.subr.bf16.mxu0 %v5513_v54 }
 0xab6   : > { %2592 = vmatprep.mubr.f32.mxu1 %v4945_v1  ;;  %2663 = vmatprep.mubr.f32.mxu0 %v4945_v1 }
 0xab8   : > { %4157 = vmatpush1.bf16.msra.mxu1 %v5517_v60  ;;  %4189 = vmatpush1.bf16.msra.mxu0 %v5519_v61 }
 0xab9   : > { %4159 = vmatprep.subr.bf16.mxu1 %v5523_v2  ;;  %4191 = vmatprep.subr.bf16.mxu0 %v5525_v3 }
 0xabc   : > { %4161 = vmatpush1.bf16.msra.mxu1 %v5531_v10  ;;  %4193 = vmatpush1.bf16.msra.mxu0 %v5533_v11 }
 0xabd   : > { %4163 = vmatprep.subr.bf16.mxu1 %v5537_v14  ;;  %4195 = vmatprep.subr.bf16.mxu0 %v5539_v15 }
 0xac0   : > { %4165 = vmatpush1.bf16.msra.mxu1 %v5543_v23  ;;  %4197 = vmatpush1.bf16.msra.mxu0 %v5545_v24 }
 0xac1   : > { %4167 = vmatprep.subr.bf16.mxu1 %v5549_v27  ;;  %4199 = vmatprep.subr.bf16.mxu0 %v5551_v30 }
 0xac4   : > { %4169 = vmatpush1.bf16.msra.mxu1 %v5555_v37  ;;  %4201 = vmatpush1.bf16.msra.mxu0 %v5557_v38 }
 0xac5   : > { %4171 = vmatprep.subr.bf16.mxu1 %v5561_v41  ;;  %4203 = vmatprep.subr.bf16.mxu0 %v5563_v42 }
 0xac8   : > { %4173 = vmatpush1.bf16.msra.mxu1 %v5567_v55  ;;  %4205 = vmatpush1.bf16.msra.mxu0 %v5569_v20 }
 0xac9   : > { %4175 = vmatprep.subr.bf16.mxu1 %v5573_v58  ;;  %4207 = vmatprep.subr.bf16.mxu0 %v5575_v59 }
 0xacc   : > { %4177 = vmatpush1.bf16.msra.mxu1 %v5579_v8  ;;  %4209 = vmatpush1.bf16.msra.mxu0 %v5581_v9 }
 0xacd   : > { %4179 = vmatprep.subr.bf16.mxu1 %v5585_v13  ;;  %4211 = vmatprep.subr.bf16.mxu0 %v5587_v16 }
 0xad0   : > { %4181 = vmatpush1.bf16.msra.mxu1 %v5591_v21  ;;  %4213 = vmatpush1.bf16.msra.mxu0 %v5593_v22 }
 0xad1   : > { %4215 = vmatprep.subr.bf16.mxu1 %v5497_v28  ;;  %4247 = vmatprep.subr.bf16.mxu0 %v5499_v29 }
 0xb86   : > { %v2406_v51 = vpop.f32.mrb[14].mxu1  ;;  %v2477_v5 = vpop.f32.mrb[16].mxu0 }
 0xb87   : > { %v2486_v33 = vrot.slane %v2406_v51, 3  ;;  %v2408_v34 = vpop.f32.mrb[15].mxu1  ;;  %v2479_v35 = vpop.f32.mrb[17].mxu0  ;;  %v2488_v43 = vrot.slane %v2477_v5, 3 }
 0xb88   : > { %v2487_v36 = vrot.slane %v2408_v34, 3  ;;  %v2489_v52 = vrot.slane %v2479_v35, 3 }
 0xb89   : > { %v2494_v39 = vadd.f32 %v2486_v33, %v5638_v45  ;;  %v2496_v28 = vadd.f32 %v2488_v43, %v5640_v50  ;;  %v2916_v43 = vld [vmem:[#allocation13 + $0x8] sm:$0xff] }
 0xb8a   : > { %v2495_v57 = vadd.f32 %v2487_v36, %v5642_v56  ;;  %v2497_v29 = vadd.f32 %v2489_v52, %v5644_v46 }
 0xb8b   : > { %v3355_v6 = vmul.f32 -1.442695, %v2494_v39  ;;  %v3357_v62 = vmul.f32 -1.442695, %v2496_v28  ;;  %v2917_v28 = vld [vmem:[#allocation13 + $0x10] sm:$0xff] }
 0xb8c   : > { %v3356_v17 = vmul.f32 -1.442695, %v2495_v57 }
 0xb8d   : > { %4536 = vpow2.f32 %v3355_v6 }
 0xb8e   : > { %4538 = vpow2.f32 %v3356_v17  ;;  %v2915_v17 = vld [vmem:[#allocation13] sm:$0xff] }
 0xb8f   : > { %4540 = vtanh.f32 %v2497_v29  ;;  %v4279_v52 = vpack.c.bf16 %v2916_v43, %v2915_v17  ;;  %v2918_v29 = vld [vmem:[#allocation13 + $0x18] sm:$0xff]  ;;  %v3038_v17 = vld [vmem:[#allocation16 + $0x8] sm:$0xff] }
 0xb90   : > { %4542 = vpow2.f32 %v3357_v62  ;;  %v4282_v62 = vpack.c.bf16 %v2918_v29, %v2917_v28  ;;  %v3039_v43 = vld [vmem:[#allocation16 + $0x10] sm:$0xff]  ;;  %v3040_v28 = vld [vmem:[#allocation16 + $0x18] sm:$0xff] }
 0xb91   : > { %v4306_v29 = vpack.c.bf16 %v3040_v28, %v3039_v43 }
 0xb97   : > { %v4537_v63 = vpop.eup %4536 }
 0xb98   : > { %v2507_v4 = vadd.f32 1.0, %v4537_v63  ;;  %v4539_v32 = vpop.eup %4538  ;;  %v2919_v63 = vld [vmem:[#allocation13 + $0x20] sm:$0xff] }
 0xb99   : > { %v2508_v40 = vadd.f32 1.0, %v4539_v32  ;;  %v4541_v7 = vpop.eup %4540 }
 0xb9a   : > { %4544 = vrcp.f32 %v2507_v4  ;;  %v4543_v12 = vpop.eup %4542  ;;  %v2920_v4 = vld [vmem:[#allocation13 + $0x28] sm:$0xff] }
 0xb9b   : > { %4546 = vrcp.f32 %v2508_v40  ;;  %v2509_v51 = vadd.f32 1.0, %v4543_v12  ;;  %v4285_v32 = vpack.c.bf16 %v2920_v4, %v2919_v63  ;;  %v2921_v40 = vld [vmem:[#allocation13 + $0x30] sm:$0xff]  ;;  %v2923_v12 = vld [vmem:[#allocation13 + $0x40] sm:$0xff] }
 0xb9d   : > { %4548 = vrcp.f32 %v2509_v51  ;;  %v2927_v51 = vld [vmem:[#allocation13 + $0x60] sm:$0xff] }
 0xba4   : > { %v4545_v44 = vpop.eup %4544 }
 0xba5   : > { %v2521_v25 = vmul.f32 %v4545_v44, %v4541_v7  ;;  %v4547_v26 = vpop.eup %4546  ;;  %v2924_v44 = vld [vmem:[#allocation13 + $0x48] sm:$0xff] }
 0xba6   : > { %v2520_v5 = vmul.f32 %v4547_v26, %v2518_v19  ;;  %v4291_v19 = vpack.c.bf16 %v2924_v44, %v2923_v12  ;;  %v2926_v26 = vld [vmem:[#allocation13 + $0x58] sm:$0xff] }
 0xba7   : > { %v4549_v34 = vpop.eup %4548  ;;  %v3043_v12 = vld [vmem:[#allocation16 + $0x30] sm:$0xff]  ;;  %v3044_v44 = vld [vmem:[#allocation16 + $0x38] sm:$0xff] }
 0xba8   : > { %v5877_v33 = vadd.f32 %v2521_v25, %v2520_v5  ;;  %v2925_v25 = vld [vmem:[#allocation13 + $0x50] sm:$0xff] }
 0xba9   : > { %v4294_v5 = vpack.c.bf16 %v2926_v26, %v2925_v25  ;;  %v3045_v25 = vld [vmem:[#allocation16 + $0x40] sm:$0xff]  ;;  %v3046_v26 = vld [vmem:[#allocation16 + $0x48] sm:$0xff] }
 0xbaa   : > { %4550 = vtanh.f32 %v5877_v33 }
 0xbb4   : > { %v4551_v35 = vpop.eup %4550 }
 0xbb5   : > { %v2524_v36 = vmul.f32 %v4551_v35, %v4549_v34  ;;  %v2929_v35 = vld [vmem:[#allocation13 + $0x70] sm:$0xff] }
 0xbb7   : > { %v2526_v39 = vrot.slane %v2524_v36, 5  ;;  %v5881_v57 = vsel %vm2909_vm7, %v5836_v31, %v2524_v36  ;;  %v2930_v36 = vld [vmem:[#allocation13 + $0x78] sm:$0xff] }
 0xbb9   : > { %2593 = vmatmul.mubr.f32.vlgmr.msra.gmra.mrb[16].mxu1 %v2526_v39  ;;  %2664 = vmatmul.mubr.f32.vlgmr.msra.gmra.mrb[18].mxu0 %v2526_v39  ;;  %v4300_v39 = vpack.c.bf16 %v2930_v36, %v2929_v35  ;;  %v3050_v35 = vld [vmem:[#allocation16 + $0x68] sm:$0xff] }
 0xbba   : > { %4217 = vmatpush1.bf16.msra.mxu1 %v5507_v48  ;;  %4249 = vmatpush1.bf16.msra.mxu0 %v5509_v49 }
 0xbbb   : > { %4219 = vmatprep.subr.bf16.mxu1 %v5511_v53  ;;  %4251 = vmatprep.subr.bf16.mxu0 %v5513_v54 }
 0xbbc   : > { %2780 = vmatprep.mubr.f32.mxu1 %v4945_v1  ;;  %2851 = vmatprep.mubr.f32.mxu0 %v4945_v1 }
 0xbbe   : > { %4221 = vmatpush1.bf16.msra.mxu1 %v5517_v60  ;;  %4253 = vmatpush1.bf16.msra.mxu0 %v5519_v61 }
 0xbbf   : > { %4223 = vmatprep.subr.bf16.mxu1 %v5523_v2  ;;  %4255 = vmatprep.subr.bf16.mxu0 %v5525_v3 }
 0xbc2   : > { %4225 = vmatpush1.bf16.msra.mxu1 %v5531_v10  ;;  %4257 = vmatpush1.bf16.msra.mxu0 %v5533_v11 }
 0xbc3   : > { %4227 = vmatprep.subr.bf16.mxu1 %v5537_v14  ;;  %4259 = vmatprep.subr.bf16.mxu0 %v5539_v15 }
 0xbc6   : > { %4229 = vmatpush1.bf16.msra.mxu1 %v5543_v23  ;;  %4261 = vmatpush1.bf16.msra.mxu0 %v5545_v24 }
 0xbc7   : > { %4231 = vmatprep.subr.bf16.mxu1 %v5549_v27  ;;  %4263 = vmatprep.subr.bf16.mxu0 %v5551_v30 }
 0xbca   : > { %4233 = vmatpush1.bf16.msra.mxu1 %v5555_v37  ;;  %4265 = vmatpush1.bf16.msra.mxu0 %v5557_v38 }
 0xbcb   : > { %4235 = vmatprep.subr.bf16.mxu1 %v5561_v41  ;;  %4267 = vmatprep.subr.bf16.mxu0 %v5563_v42 }
 0xbce   : > { %4237 = vmatpush1.bf16.msra.mxu1 %v5567_v55  ;;  %4269 = vmatpush1.bf16.msra.mxu0 %v5569_v20 }
 0xbcf   : > { %4239 = vmatprep.subr.bf16.mxu1 %v5573_v58  ;;  %4271 = vmatprep.subr.bf16.mxu0 %v5575_v59  ;;  %v2706_v58 = vrot.slane %v5877_v33, 7  ;;  %v2928_v33 = vld [vmem:[#allocation13 + $0x68] sm:$0xff] }
 0xbd0   : > { %v4297_v34 = vpack.c.bf16 %v2928_v33, %v2927_v51  ;;  %v4315_v51 = vpack.c.bf16 %v3046_v26, %v3045_v25 }
 0xbd2   : > { %4241 = vmatpush1.bf16.msra.mxu1 %v5579_v8  ;;  %4273 = vmatpush1.bf16.msra.mxu0 %v5581_v9 }
 0xbd3   : > { %4243 = vmatprep.subr.bf16.mxu1 %v5585_v13  ;;  %4275 = vmatprep.subr.bf16.mxu0 %v5587_v16 }
 0xbd6   : > { %4245 = vmatpush1.bf16.msra.mxu1 %v5591_v21  ;;  %4277 = vmatpush1.bf16.msra.mxu0 %v5593_v22 }
 0xbd7   : > { %4278 = vmatprep.subr.bf16.mxu1 %v4943_v0  ;;  %4302 = vmatprep.subr.bf16.mxu0 %v4943_v0 }
 0xc8c   : > { %v2594_v48 = vpop.f32.mrb[16].mxu1  ;;  %v2665_v49 = vpop.f32.mrb[18].mxu0 }
 0xc8d   : > { %v2674_v53 = vrot.slane %v2594_v48, 2  ;;  %v2596_v54 = vpop.f32.mrb[17].mxu1  ;;  %v2667_v60 = vpop.f32.mrb[19].mxu0  ;;  %v2676_v14 = vrot.slane %v2665_v49, 2 }
 0xc8e   : > { %v2675_v61 = vrot.slane %v2596_v54, 2  ;;  %v2677_v15 = vrot.slane %v2667_v60, 2 }
 0xc8f   : > { %v2682_v2 = vadd.f32 %v2674_v53, %v5638_v45  ;;  %v2684_v23 = vadd.f32 %v2676_v14, %v5640_v50 }
 0xc90   : > { %v2683_v3 = vadd.f32 %v2675_v61, %v5642_v56  ;;  %v2685_v24 = vadd.f32 %v2677_v15, %v5644_v46 }
 0xc91   : > { %v3358_v10 = vmul.f32 -1.442695, %v2682_v2  ;;  %v3360_v27 = vmul.f32 -1.442695, %v2684_v23 }
 0xc92   : > { %v3359_v11 = vmul.f32 -1.442695, %v2683_v3 }
 0xc93   : > { %4552 = vpow2.f32 %v3358_v10 }
 0xc94   : > { %4554 = vpow2.f32 %v3359_v11 }
 0xc95   : > { %4556 = vtanh.f32 %v2685_v24 }
 0xc96   : > { %4558 = vpow2.f32 %v3360_v27 }
 0xc9d   : > { %v4553_v30 = vpop.eup %4552 }
 0xc9e   : > { %v2695_v37 = vadd.f32 1.0, %v4553_v30  ;;  %v4555_v38 = vpop.eup %4554 }
 0xc9f   : > { %v2696_v41 = vadd.f32 1.0, %v4555_v38  ;;  %v4557_v42 = vpop.eup %4556 }
 0xca0   : > { %4560 = vrcp.f32 %v2695_v37  ;;  %v4559_v55 = vpop.eup %4558 }
 0xca1   : > { %4562 = vrcp.f32 %v2696_v41  ;;  %v2697_v9 = vadd.f32 1.0, %v4559_v55 }
 0xca3   : > { %4564 = vrcp.f32 %v2697_v9 }
 0xcaa   : > { %v4561_v20 = vpop.eup %4560 }
 0xcab   : > { %v2709_v59 = vmul.f32 %v4561_v20, %v4557_v42  ;;  %v4563_v8 = vpop.eup %4562 }
 0xcac   : > { %v2708_v13 = vmul.f32 %v4563_v8, %v2706_v58 }
 0xcad   : > { %v4565_v21 = vpop.eup %4564 }
 0xcae   : > { %v5922_v16 = vadd.f32 %v2709_v59, %v2708_v13 }
 0xcb0   : > { %4566 = vtanh.f32 %v5922_v16  ;;  %v2894_v42 = vrot.slane %v5922_v16, 7  ;;  %v3037_v16 = vld [vmem:[#allocation16] sm:$0xff] }
 0xcba   : > { %v4567_v22 = vpop.eup %4566 }
 0xcbb   : > { %v2712_v18 = vmul.f32 %v4567_v22, %v4565_v21  ;;  %v3364_v21 = vld [vmem:[#allocation15] ss:$0 sm:$0xff] }
 0xcbd   : > { %v2714_v31 = vrot.slane %v2712_v18, 6  ;;  %v5926_v6 = vsel %vm2911_vm8, %v5881_v57, %v2712_v18 }
 0xcbf   : > { %2781 = vmatmul.mubr.f32.vlgmr.msra.gmra.mrb[18].mxu1 %v2714_v31  ;;  %2852 = vmatmul.mubr.f32.vlgmr.msra.gmra.mrb[20].mxu0 %v2714_v31 }
 0xcc0   : > { %3592 = vmatprep.mubr.msk.f32.mxu1 %vm4944_vm0, %v4945_v1  ;;  %3627 = vmatprep.mubr.msk.f32.mxu0 %vm4944_vm0, %v4945_v1  ;;  %v2922_v1 = vld [vmem:[#allocation13 + $0x38] sm:$0xff] }
 0xcc1   : > { %4280 = vmatpush3.bf16.msra.mxu1 %v4279_v52  ;;  %v4288_v7 = vpack.c.bf16 %v2922_v1, %v2921_v40  ;;  %v4303_v52 = vpack.c.bf16 %v3038_v17, %v3037_v16  ;;  %v3041_v40 = vld [vmem:[#allocation16 + $0x20] sm:$0xff]  ;;  %v3042_v1 = vld [vmem:[#allocation16 + $0x28] sm:$0xff] }
 0xcc2   : > { %4281 = vmatprep.subr.bf16.mxu1 %v4943_v0 }
 0xcc3   : > { %4304 = vmatpush3.bf16.msra.mxu0 %v4303_v52 }
 0xcc4   : > { %4305 = vmatprep.subr.bf16.mxu0 %v4943_v0 }
 0xcc5   : > { %4283 = vmatpush3.bf16.msra.mxu1 %v4282_v62 }
 0xcc6   : > { %4284 = vmatprep.subr.bf16.mxu1 %v4943_v0 }
 0xcc7   : > { %4307 = vmatpush3.bf16.msra.mxu0 %v4306_v29 }
 0xcc8   : > { %4308 = vmatprep.subr.bf16.mxu0 %v4943_v0 }
 0xcc9   : > { %4286 = vmatpush3.bf16.msra.mxu1 %v4285_v32 }
 0xcca   : > { %4287 = vmatprep.subr.bf16.mxu1 %v4943_v0 }
 0xccd   : > { %4289 = vmatpush3.bf16.msra.mxu1 %v4288_v7  ;;  %v4309_v7 = vpack.c.bf16 %v3042_v1, %v3041_v40 }
 0xcce   : > { %4290 = vmatprep.subr.bf16.mxu1 %v4943_v0 }
 0xccf   : > { %4310 = vmatpush3.bf16.msra.mxu0 %v4309_v7 }
 0xcd0   : > { %4311 = vmatprep.subr.bf16.mxu0 %v4943_v0 }
 0xcd1   : > { %4292 = vmatpush3.bf16.msra.mxu1 %v4291_v19  ;;  %v4312_v19 = vpack.c.bf16 %v3044_v44, %v3043_v12 }
 0xcd2   : > { %4293 = vmatprep.subr.bf16.mxu1 %v4943_v0 }
 0xcd3   : > { %4313 = vmatpush3.bf16.msra.mxu0 %v4312_v19 }
 0xcd4   : > { %4314 = vmatprep.subr.bf16.mxu0 %v4943_v0 }
 0xcd5   : > { %4295 = vmatpush3.bf16.msra.mxu1 %v4294_v5  ;;  %v3048_v5 = vld [vmem:[#allocation16 + $0x58] sm:$0xff] }
 0xcd6   : > { %4296 = vmatprep.subr.bf16.mxu1 %v4943_v0  ;;  %v4318_v33 = vpack.c.bf16 %v3048_v5, %v3047_v47 }
 0xcd7   : > { %4316 = vmatpush3.bf16.msra.mxu0 %v4315_v51 }
 0xcd8   : > { %4317 = vmatprep.subr.bf16.mxu0 %v4943_v0 }
 0xcd9   : > { %4298 = vmatpush3.bf16.msra.mxu1 %v4297_v34  ;;  %v3049_v34 = vld [vmem:[#allocation16 + $0x60] sm:$0xff] }
 0xcda   : > { %4299 = vmatprep.subr.bf16.mxu1 %v4943_v0  ;;  %v4321_v36 = vpack.c.bf16 %v3050_v35, %v3049_v34 }
 0xcdb   : > { %4319 = vmatpush3.bf16.msra.mxu0 %v4318_v33 }
 0xcdc   : > { %4320 = vmatprep.subr.bf16.mxu0 %v4943_v0 }
 0xcdd   : > { %4301 = vmatpush3.bf16.msra.mxu1 %v4300_v39  ;;  %v3051_v39 = vld [vmem:[#allocation16 + $0x70] sm:$0xff] }
 0xcdf   : > { %4322 = vmatpush3.bf16.msra.mxu0 %v4321_v36 }
 0xce0   : > { %4323 = vmatprep.subr.bf16.mxu0 %v4943_v0  ;;  %v3367_v0 = vld [vmem:[#allocation18] ss:$0 sm:$0xff] }
 0xd92   : > { %v2782_v57 = vpop.f32.mrb[18].mxu1  ;;  %v2853_v48 = vpop.f32.mrb[20].mxu0 }
 0xd93   : > { %v2862_v49 = vrot.slane %v2782_v57, 1  ;;  %v2784_v53 = vpop.f32.mrb[19].mxu1  ;;  %v2855_v54 = vpop.f32.mrb[21].mxu0  ;;  %v2864_v11 = vrot.slane %v2853_v48, 1  ;;  %v3052_v57 = vld [vmem:[#allocation16 + $0x78] sm:$0xff] }
 0xd94   : > { %v2863_v60 = vrot.slane %v2784_v53, 1  ;;  %v2865_v14 = vrot.slane %v2855_v54, 1  ;;  %v4324_v48 = vpack.c.bf16 %v3052_v57, %v3051_v39 }
 0xd95   : > { %v2870_v61 = vadd.f32 %v2862_v49, %v5638_v45  ;;  %v2872_v15 = vadd.f32 %v2864_v11, %v5640_v50 }
 0xd96   : > { %v2871_v2 = vadd.f32 %v2863_v60, %v5642_v56  ;;  %v2873_v23 = vadd.f32 %v2865_v14, %v5644_v46  ;;  %4325 = vmatpush3.bf16.msra.mxu0 %v4324_v48 }
 0xd97   : > { %v3361_v3 = vmul.f32 -1.442695, %v2870_v61  ;;  %v3363_v24 = vmul.f32 -1.442695, %v2872_v15  ;;  %v3365_v61 = vld [vmem:[%s6034_s20] ss:$0 sm:$0xff] }
 0xd98   : > { %v3362_v10 = vmul.f32 -1.442695, %v2871_v2 }
 0xd99   : > { %4568 = vpow2.f32 %v3361_v3  ;;  %v3366_v3 = vld [vmem:[%s6035_s2] ss:$0 sm:$0xff] }
 0xd9a   : > { %4570 = vpow2.f32 %v3362_v10 }
 0xd9b   : > { %4572 = vtanh.f32 %v2873_v23 }
 0xd9c   : > { %4574 = vpow2.f32 %v3363_v24 }
 0xda3   : > { %v4569_v27 = vpop.eup %4568 }
 0xda4   : > { %v2883_v30 = vadd.f32 1.0, %v4569_v27  ;;  %v4571_v37 = vpop.eup %4570 }
 0xda5   : > { %v2884_v45 = vadd.f32 1.0, %v4571_v37  ;;  %v4573_v56 = vpop.eup %4572 }
 0xda6   : > { %4576 = vrcp.f32 %v2883_v30  ;;  %v4575_v38 = vpop.eup %4574 }
 0xda7   : > { %4578 = vrcp.f32 %v2884_v45  ;;  %v2885_v58 = vadd.f32 1.0, %v4575_v38 }
 0xda9   : > { %4580 = vrcp.f32 %v2885_v58 }
 0xdb0   : > { %v4577_v41 = vpop.eup %4576 }
 0xdb1   : > { %v2897_v55 = vmul.f32 %v4577_v41, %v4573_v56  ;;  %v4579_v20 = vpop.eup %4578 }
 0xdb2   : > { %v2896_v50 = vmul.f32 %v4579_v20, %v2894_v42 }
 0xdb3   : > { %v4581_v46 = vpop.eup %4580 }
 0xdb4   : > { %v2898_v59 = vadd.f32 %v2897_v55, %v2896_v50 }
 0xdb6   : > { %4582 = vtanh.f32 %v2898_v59 }
 0xdc0   : > { %v4583_v8 = vpop.eup %4582 }
 0xdc1   : > { %v2900_v9 = vmul.f32 %v4583_v8, %v4581_v46 }
 0xdc3   : > { %v2914_v13 = vsel %vm2913_vm9, %v5926_v6, %v2900_v9 }
 0xdc4   : > { %3593 = vmatmul.mubr.f32.vlgmr.msra.gmra.mrb[20].mxu1 %v2914_v13 }
 0xe97   : > { %v3004_v22 = vpop.f32.mrb[20].mxu1 }
 0xe98   : > { %v3005_v18 = vadd.f32 %v3364_v21, %v3004_v22  ;;  %v3594_v31 = vpop.f32.mrb[21].mxu1 }
 0xe9a   : > { %3010 = vadd.xlane.f32.xlu0 %v3005_v18 }
 0xf27   : > { %v3011_v62 = vpop.xlane.xlu0 %3010 }
 0xf28   : > { %v3012_v6 = vmul.f32 0.03125, %v3011_v62 }
 0xf2a   : > { %v3013_v63 = vsub.f32 %v3005_v18, %v3012_v6 }
 0xf2c   : > { %v3014_v4 = vsel %vm892_vm1, %v3013_v63, 0.0 }
 0xf2d   : > { %v3015_v32 = vmul.f32 %v3014_v4, %v3014_v4 }
 0xf2f   : > { %3016 = vadd.xlane.f32.xlu1 %v3015_v32 }
 0xfbc   : > { %v3017_v49 = vpop.xlane.xlu1 %3016 }
 0xfbd   : > { %v3018_v53 = vmul.f32 0.03125, %v3017_v49 }
 0xfbf   : > { %v3019_v54 = vadd.f32 1e-05, %v3018_v53 }
 0xfc1   : > { %4584 = vrsqrt.f32 %v3019_v54 }
 0xfcb   : > { %v4585_v60 = vpop.eup %4584 }
 0xfcc   : > { %v3021_v2 = vmul.f32 %v4585_v60, %v3013_v63 }
 0xfce   : > { %v3028_v10 = vmul.f32 %v3365_v61, %v3021_v2 }
 0xfd0   : > { %v3035_v11 = vadd.f32 %v3366_v3, %v3028_v10 }
 0xfd2   : > { %v3036_v14 = vmax.f32 %v3035_v11, 0.0 }
 0xfd4   : > { %3628 = vmatmul.mubr.f32.vlgmr.msra.gmra.mrb[22].mxu0 %v3036_v14 }
0x10a7   : > { %v3126_v15 = vpop.f32.mrb[22].mxu0 }
0x10a8   : > { %v3127_v23 = vadd.f32 %v3367_v0, %v3126_v15  ;;  %v3629_v24 = vpop.f32.mrb[23].mxu0 }
0x10aa   : > { %4586 = vtanh.f32 %v3127_v23 }
0x10b4   : > { %v4587_v27 = vpop.eup %4586 }
0x10b5   : > { %3131 = vst [vmem:[%s789_s28] sm:$0xff] %v4587_v27 }
0x10b6 PF: > { %s6037_s21 = sld [smem:[#allocation25_spill]] }
0x10bc   : > { %s36_s1 = sadd.s32 1, %s6037_s21  }
0x10bd   : > { %p33_p2 = scmp.ge.s32.totalorder %s36_s1, 4  }
0x10bf   :  { %35 = sbr.rel (!%p33_p2) target bundleno = 17 (0x11), region = 178 }
0x10c6   :  { %3151 = vsyncpa [#allocation3], 1 }
0x10c7   :  { %3153 = vsyncpa [#allocation3 + $0x1], 1 }
0x10c8   :  { %3154 = vsyncpa [#allocation5], 1 }
0x10c9   :  { %3155 = vsyncpa [#allocation8], 1 }
0x10ca   :  { %3156 = vsyncpa [#allocation11], 1 }
0x10cb   :  { %3157 = vsyncpa [#allocation14], 1 }
0x10cc   :  { %3158 = vsyncpa [#allocation17], 1 }

</bundles_post_ra>
